<compile_context>
chip_gen: v7x
topology: tpu7x:2x2x1
jax: 0.10.0
libtpu: 0.0.40
codegen_flags: <defaults>
</compile_context>

<pallas_src>
import math

import jax
import jax.numpy as jnp
from jax.experimental import pallas as pl
from jax.experimental.pallas import tpu as pltpu


_MIB = 1024 * 1024
_TARGET_STEP_BYTES = 2 * _MIB          # activation HBM traffic to aim for per grid step
_MAX_PACKED_WEIGHT_BYTES = 8 * _MIB    # cap on block-diagonal weight footprint
_MAX_PACK_GROUP = 64                   # cap on rows packed into the lane axis

_tpu_budget_cache = None


def _round_up(x, m):
    return ((x + m - 1) // m) * m


def _tpu_budget():
    """(vmem_limit_bytes, tile_budget_bytes, num_tensorcores) derived per chip."""
    global _tpu_budget_cache
    if _tpu_budget_cache is not None:
        return _tpu_budget_cache
    cap, cores = 64 * _MIB, 1          # conservative fallback: v7x-sized VMEM, 1 TC
    try:
        info = pltpu.get_tpu_info()
        cap = int(info.vmem_capacity_bytes)
        for attr in ("num_tensorcores", "tensorcore_count", "num_cores", "core_count"):
            v = getattr(info, attr, None)
            if isinstance(v, int) and v > 0:
                cores = v
                break
        else:
            cores = 2 if cap <= 64 * _MIB else 1   # v7x: 64 MiB / TC, 2 TCs per chip
    except Exception:
        pass
    # v5e/v6e (128 MiB): 96 MiB limit; v7x (64 MiB/TC): 48 MiB limit.
    vmem_limit = max(16 * _MIB, min(cap * 3 // 4, cap - 16 * _MIB))
    tile_budget = max(8 * _MIB, vmem_limit - 8 * _MIB)   # headroom for compiler scratch
    _tpu_budget_cache = (int(vmem_limit), int(tile_budget), int(cores))
    return _tpu_budget_cache


def _choose_lane_pack(widths, itemsize):
    """Smallest g such that every layer width * g is a multiple of 128 lanes."""
    g = 1
    for w in widths:
        g = math.lcm(g, 128 // math.gcd(128, w))
    if g == 1 or g > _MAX_PACK_GROUP:
        return 1
    bd_bytes = sum((g * a) * (g * b) * itemsize for a, b in zip(widths[:-1], widths[1:]))
    if bd_bytes > _MAX_PACKED_WEIGHT_BYTES:
        return 1                        # wide hidden sizes are already lane-dense enough
    return g


def _block_diag_weight(w, g):
    """[d_in, d_out] -> g-way block-diagonal [g*d_in, g*d_out]."""
    if g == 1:
        return w
    di, do = w.shape
    eye = jnp.eye(g, dtype=w.dtype)
    return jnp.einsum("gh,io->giho", eye, w).reshape(g * di, g * do)


def _tile_bias(b, g):
    return b if g == 1 else jnp.tile(b, (1, g))


def _auto_row_tile(n_rows, widths, itemsize, tile_budget, num_cores, sub):
    """Row tile (in packed rows): byte-based sizing + VMEM cap + TC-aware split."""
    d_in, d_out = widths[0], widths[-1]
    d_h_max = max(widths)
    traffic_per_row = (d_in + d_out) * itemsize                   # HBM bytes moved per row
    vmem_per_row = 2 * (d_in + d_out) * itemsize + 8 * d_h_max    # dbl-buffered act tiles + f32 temps
    # Resident weights/biases (constant index_map); counted double-buffered to stay
    # conservative.  (Single-buffering them only matters for very wide hidden sizes.)
    w_bytes = 2 * sum((a * b + b) * itemsize for a, b in zip(widths[:-1], widths[1:]))

    # Byte-based sizing: ~2 MiB of activation traffic per step amortizes the
    # ~0.35 us per-grid-step pipeline overhead.
    tm = max(sub, _TARGET_STEP_BYTES // traffic_per_row)
    while tm > sub and w_bytes + tm * vmem_per_row > tile_budget:
        tm //= 2
    tm = max(sub, _round_up(min(tm, _round_up(n_rows, sub)), sub))

    # Multi-TC chips (v7x): keep the "parallel" row axis shardable with a step count
    # that is a multiple of the core count so no TensorCore idles.  Single-TC chips
    # (v5e/v6e) keep one big step: their grid is a serial loop, splitting only adds
    # per-step overhead.
    if num_cores > 1 and n_rows >= 2 * sub * num_cores:
        steps = pl.cdiv(n_rows, tm)
        steps = max(num_cores, _round_up(steps, num_cores))
        tm = max(sub, _round_up(pl.cdiv(n_rows, steps), sub))
    return tm


def _make_mlp_kernel(num_layers):
    """Fused Linear [, ReLU, Linear]* over one row tile of x."""

    def kernel(*refs):
        x_ref, o_ref = refs[0], refs[-1]
        h = x_ref[...]
        for layer in range(num_layers):
            w_ref = refs[1 + 2 * layer]
            b_ref = refs[2 + 2 * layer]
            # MXU matmul with f32 accumulation; bias add / ReLU stay in f32 on the VPU.
            # Inter-layer activations are never downcast, even for low-precision weights.
            h = jnp.dot(h, w_ref[...], preferred_element_type=jnp.float32)
            h = h + b_ref[...].astype(jnp.float32)
            if layer < num_layers - 1:
                h = jnp.maximum(h, 0.0)
        o_ref[...] = h.astype(o_ref.dtype)

    return kernel


def mlp_pallas(x, params, *, tm=None, io_dtype=None):
    """Applies an MLP (Linear [, ReLU, Linear]*) row-tiled over x.

    Args:
      x: [n, d_in] activations.
      params: sequence of (W, b) with W: [d_in_l, d_out_l], b: [1, d_out_l].
      tm: optional row-tile override in *packed* rows (sweepable); auto if None.
      io_dtype: optional activation I/O dtype (e.g. jnp.bfloat16) to halve HBM
        traffic; matmul accumulation, bias add and ReLU stay in f32.
    """
    params = tuple(params)
    if io_dtype is not None and x.dtype != io_dtype:
        x = x.astype(io_dtype)
    n, d_in = x.shape
    widths = [d_in] + [w.shape[1] for (w, _b) in params]
    d_out = widths[-1]
    itemsize = jnp.dtype(x.dtype).itemsize
    sub = max(8, 32 // itemsize)                   # sublane tile: 8 for f32, 16 for bf16

    vmem_limit, tile_budget, num_cores = _tpu_budget()

    # --- Lane packing: g rows -> lane axis (free row-major reshape) + block-diag W,
    # so DMAs / stores are 128-lane dense and the MXU sees full K/N tiles. ---
    g = _choose_lane_pack(widths, itemsize)
    if g > 1:
        n_pad = _round_up(n, g)
        if n_pad != n:
            # Cheap for graph-sized inputs; only costs an extra pass over x when n is
            # both huge and not a multiple of g.
            x = jnp.pad(x, ((0, n_pad - n), (0, 0)))
        xp = x.reshape(n_pad // g, g * d_in)
        packed = tuple((_block_diag_weight(w, g), _tile_bias(b, g)) for (w, b) in params)
    else:
        n_pad, xp, packed = n, x, params
    n_rows = xp.shape[0]
    packed_widths = [g * w for w in widths]

    if tm is None:
        tm = _auto_row_tile(n_rows, packed_widths, itemsize, tile_budget, num_cores, sub)
    if n_rows <= sub:
        tm = n_rows                                # single full-extent block
    else:
        tm = max(sub, _round_up(min(tm, _round_up(n_rows, sub)), sub))

    in_specs = [pl.BlockSpec((tm, packed_widths[0]), lambda i: (i, 0))]   # x row tile
    flat_inputs = [xp]
    for (w, b) in packed:
        di, do = w.shape
        # Full-resident weights/biases: constant block index so they are DMA'd once
        # and reused across the whole grid (footprint counted in the VMEM budget).
        in_specs.append(pl.BlockSpec((di, do), lambda i: (0, 0)))
        in_specs.append(pl.BlockSpec((1, do), lambda i: (0, 0)))
        flat_inputs += [w, b]

    grid = (pl.cdiv(n_rows, tm),)   # partial last tile is masked by Pallas (row-wise math only)

    out_p = pl.pallas_call(
        _make_mlp_kernel(len(params)),
        out_shape=jax.ShapeDtypeStruct((n_rows, packed_widths[-1]), x.dtype),
        grid_spec=pltpu.PrefetchScalarGridSpec(
            num_scalar_prefetch=0,
            grid=grid,
            in_specs=in_specs,
            out_specs=pl.BlockSpec((tm, packed_widths[-1]), lambda i: (i, 0)),
        ),
        compiler_params=pltpu.CompilerParams(
            dimension_semantics=("parallel",),     # independent row tiles; shards TCs on v7x
            vmem_limit_bytes=vmem_limit,
        ),
    )(*flat_inputs)

    if g == 1:
        return out_p
    out = out_p.reshape(n_pad, d_out)              # free row-major reshape
    return out if n_pad == n else out[:n]


def _init_linear(key, d_in, d_out, dtype=jnp.float32):
    """PyTorch nn.Linear-style uniform(-1/sqrt(d_in), 1/sqrt(d_in)) init."""
    kw, kb = jax.random.split(key)
    bound = 1.0 / float(d_in) ** 0.5
    w = jax.random.uniform(kw, (d_in, d_out), dtype, -bound, bound)
    b = jax.random.uniform(kb, (1, d_out), dtype, -bound, bound)
    return w, b


def _init_mlp(key, d_in, hidden_sizes, dtype=jnp.float32):
    keys = jax.random.split(key, len(hidden_sizes))
    params = []
    prev = d_in
    for k, h in zip(keys, hidden_sizes):
        params.append(_init_linear(k, prev, h, dtype))
        prev = h
    return tuple(params)


# Both encoders under one jit -> one XLA program, one launch, shared pipeline warmup.
# (A single fused pallas_call over [node; edge] rows with block-diag first-layer
#  weights would also remove the second call's warmup for tiny graphs; kept as two
#  calls here for generality over differing depths/hidden sizes.)
@jax.jit
def _encode_pair(node_x, edge_x, node_params, edge_params):
    return mlp_pallas(node_x, node_params), mlp_pallas(edge_x, edge_params)


@jax.jit
def _encode_one(x, params):
    return mlp_pallas(x, params)


class GraphEncoderPallas:
    """JAX/Pallas port of GraphEncoder (MLP encoders for node/edge features)."""

    def __init__(self, node_feature_dim, edge_feature_dim,
                 node_hidden_sizes=None, edge_hidden_sizes=None, *, key=None):
        assert key is not None
        self._node_hidden_sizes = node_hidden_sizes if node_hidden_sizes else None
        self._edge_hidden_sizes = edge_hidden_sizes if edge_hidden_sizes else None
        k_node, k_edge = jax.random.split(key)
        self.node_params = (_init_mlp(k_node, node_feature_dim, self._node_hidden_sizes)
                            if self._node_hidden_sizes else None)
        self.edge_params = (_init_mlp(k_edge, edge_feature_dim, self._edge_hidden_sizes)
                            if self._edge_hidden_sizes else None)

    def __call__(self, node_features, edge_features=None):
        encode_node = self.node_params is not None
        encode_edge = (edge_features is not None) and (self.edge_params is not None)
        if encode_node and encode_edge:
            return _encode_pair(node_features, edge_features,
                                self.node_params, self.edge_params)
        node_out = _encode_one(node_features, self.node_params) if encode_node else node_features
        edge_out = _encode_one(edge_features, self.edge_params) if encode_edge else edge_features
        return node_out, edge_out


def _mlp_ref(x, params):
    h = x
    for i, (w, b) in enumerate(params):
        h = h @ w + b
        if i < len(params) - 1:
            h = jnp.maximum(h, 0.0)
    return h


if __name__ == "__main__":
    key = jax.random.PRNGKey(0)
    k_nodes, k_edges, k_params, k_big = jax.random.split(key, 4)

    n_nodes, node_feat_dim = 8, 16
    n_edges, edge_feat_dim = 12, 8      # not a multiple of the lane-pack group:
                                        # exercises the pad -> packed reshape -> unpad path
    node_hidden_sizes = [32, 32]
    edge_hidden_sizes = [32, 32]

    node_features = jax.random.normal(k_nodes, (n_nodes, node_feat_dim), jnp.float32)
    edge_features = jax.random.normal(k_edges, (n_edges, edge_feat_dim), jnp.float32)

    enc = GraphEncoderPallas(node_feat_dim, edge_feat_dim,
                             node_hidden_sizes, edge_hidden_sizes, key=k_params)

    node_out, edge_out = enc(node_features, edge_features)
    node_out = jax.block_until_ready(node_out)
    edge_out = jax.block_until_ready(edge_out)

    # Correctness check against a pure-JAX reference of the same math.
    node_ref = _mlp_ref(node_features, enc.node_params)
    edge_ref = _mlp_ref(edge_features, enc.edge_params)
    assert node_out.shape == (n_nodes, node_hidden_sizes[-1])
    assert edge_out.shape == (n_edges, edge_hidden_sizes[-1])
    assert jnp.allclose(node_out, node_ref, atol=1e-5, rtol=1e-5)
    assert jnp.allclose(edge_out, edge_ref, atol=1e-5, rtol=1e-5)

    # Extra check: row count that is neither a multiple of the pack group nor of the
    # row tile (exercises cdiv grid, lane packing, byte-based tile and the masked
    # final block) while staying small.
    x_big = jax.random.normal(k_big, (300, node_feat_dim), jnp.float32)
    y_big = jax.block_until_ready(mlp_pallas(x_big, enc.node_params))
    assert y_big.shape == (300, node_hidden_sizes[-1])
    assert jnp.allclose(y_big, _mlp_ref(x_big, enc.node_params), atol=1e-5, rtol=1e-5)

    print("KERNEL_OK")
</pallas_src>

<mosaic_0001>
module attributes {stable_mosaic.version = 11 : i64} {
  func.func @kernel(%arg0: i32, %arg1: memref<1x128xf32, #tpu.memory_space<vmem>>, %arg2: memref<128x512xf32, #tpu.memory_space<vmem>>, %arg3: memref<1x512xf32, #tpu.memory_space<vmem>>, %arg4: memref<512x512xf32, #tpu.memory_space<vmem>>, %arg5: memref<1x512xf32, #tpu.memory_space<vmem>>, %arg6: memref<1x512xf32, #tpu.memory_space<vmem>>) attributes {dimension_semantics = [#tpu.dimension_semantics<parallel>], iteration_bounds = array<i64: 1>, scalar_prefetch = 0 : i64, scratch_operands = 0 : i64, tpu.core_type = #tpu.core_type<tc>, window_params = [{transform_indices = @transform_0, window_bounds = array<i64: 1, 128>}, {pipeline_mode = #tpu.pipeline_mode<synchronous>, transform_indices = @transform_1, window_bounds = array<i64: 128, 512>}, {pipeline_mode = #tpu.pipeline_mode<synchronous>, transform_indices = @transform_2, window_bounds = array<i64: 1, 512>}, {pipeline_mode = #tpu.pipeline_mode<synchronous>, transform_indices = @transform_3, window_bounds = array<i64: 512, 512>}, {pipeline_mode = #tpu.pipeline_mode<synchronous>, transform_indices = @transform_4, window_bounds = array<i64: 1, 512>}, {transform_indices = @transform_5, window_bounds = array<i64: 1, 512>}]} {
    %c0 = arith.constant 0 : index
    %c0_0 = arith.constant 0 : index
    %0 = vector.load %arg1[%c0, %c0_0] : memref<1x128xf32, #tpu.memory_space<vmem>>, vector<1x128xf32>
    %c0_1 = arith.constant 0 : index
    %c0_2 = arith.constant 0 : index
    %1 = vector.load %arg2[%c0_1, %c0_2] : memref<128x512xf32, #tpu.memory_space<vmem>>, vector<128x512xf32>
    %cst = arith.constant dense<0.000000e+00> : vector<1x512xf32>
    %2 = tpu.matmul %0, %1, %cst {dimension_numbers = #tpu.dot_dimension_numbers<[1], [0], [0], [1], [0, 0, 1, 1], [], []>} : vector<1x128xf32>, vector<128x512xf32>, vector<1x512xf32> -> vector<1x512xf32>
    %c0_3 = arith.constant 0 : index
    %c0_4 = arith.constant 0 : index
    %3 = vector.load %arg3[%c0_3, %c0_4] : memref<1x512xf32, #tpu.memory_space<vmem>>, vector<1x512xf32>
    %4 = arith.addf %2, %3 : vector<1x512xf32>
    %cst_5 = arith.constant 0.000000e+00 : f32
    %5 = vector.broadcast %cst_5 : f32 to vector<1x512xf32>
    %6 = arith.maximumf %4, %5 : vector<1x512xf32>
    %c0_6 = arith.constant 0 : index
    %c0_7 = arith.constant 0 : index
    %7 = vector.load %arg4[%c0_6, %c0_7] : memref<512x512xf32, #tpu.memory_space<vmem>>, vector<512x512xf32>
    %cst_8 = arith.constant dense<0.000000e+00> : vector<1x512xf32>
    %8 = tpu.matmul %6, %7, %cst_8 {dimension_numbers = #tpu.dot_dimension_numbers<[1], [0], [0], [1], [0, 0, 1, 1], [], []>} : vector<1x512xf32>, vector<512x512xf32>, vector<1x512xf32> -> vector<1x512xf32>
    %c0_9 = arith.constant 0 : index
    %c0_10 = arith.constant 0 : index
    %9 = vector.load %arg5[%c0_9, %c0_10] : memref<1x512xf32, #tpu.memory_space<vmem>>, vector<1x512xf32>
    %10 = arith.addf %8, %9 : vector<1x512xf32>
    %c0_11 = arith.constant 0 : index
    %c0_12 = arith.constant 0 : index
    %11 = vector.load %arg6[%c0_11, %c0_12] : memref<1x512xf32, #tpu.memory_space<vmem>>, vector<1x512xf32>
    tpu.vector_store %arg6[%c0_11, %c0_12], %10 {strides = array<i32>} : memref<1x512xf32, #tpu.memory_space<vmem>>, vector<1x512xf32>,
    return
  }
  func.func @transform_0(%arg0: i32) -> (i32, i32) {
    %c0_i32 = arith.constant 0 : i32
    %c0_i32_0 = arith.constant 0 : i32
    return %arg0, %c0_i32 : i32, i32
  }
  func.func @transform_1(%arg0: i32) -> (i32, i32) {
    %c0_i32 = arith.constant 0 : i32
    %c0_i32_0 = arith.constant 0 : i32
    %c0_i32_1 = arith.constant 0 : i32
    return %c0_i32, %c0_i32_0 : i32, i32
  }
  func.func @transform_2(%arg0: i32) -> (i32, i32) {
    %c0_i32 = arith.constant 0 : i32
    %c0_i32_0 = arith.constant 0 : i32
    %c0_i32_1 = arith.constant 0 : i32
    return %c0_i32, %c0_i32_0 : i32, i32
  }
  func.func @transform_3(%arg0: i32) -> (i32, i32) {
    %c0_i32 = arith.constant 0 : i32
    %c0_i32_0 = arith.constant 0 : i32
    %c0_i32_1 = arith.constant 0 : i32
    return %c0_i32, %c0_i32_0 : i32, i32
  }
  func.func @transform_4(%arg0: i32) -> (i32, i32) {
    %c0_i32 = arith.constant 0 : i32
    %c0_i32_0 = arith.constant 0 : i32
    %c0_i32_1 = arith.constant 0 : i32
    return %c0_i32, %c0_i32_0 : i32, i32
  }
  func.func @transform_5(%arg0: i32) -> (i32, i32) {
    %c0_i32 = arith.constant 0 : i32
    %c0_i32_0 = arith.constant 0 : i32
    return %arg0, %c0_i32 : i32, i32
  }
}

module attributes {stable_mosaic.version = 11 : i64} {
  func.func @kernel(%arg0: i32, %arg1: memref<1x128xf32, #tpu.memory_space<vmem>>, %arg2: memref<128x256xf32, #tpu.memory_space<vmem>>, %arg3: memref<1x256xf32, #tpu.memory_space<vmem>>, %arg4: memref<256x256xf32, #tpu.memory_space<vmem>>, %arg5: memref<1x256xf32, #tpu.memory_space<vmem>>, %arg6: memref<1x256xf32, #tpu.memory_space<vmem>>) attributes {dimension_semantics = [#tpu.dimension_semantics<parallel>], iteration_bounds = array<i64: 1>, scalar_prefetch = 0 : i64, scratch_operands = 0 : i64, tpu.core_type = #tpu.core_type<tc>, window_params = [{transform_indices = @transform_0, window_bounds = array<i64: 1, 128>}, {pipeline_mode = #tpu.pipeline_mode<synchronous>, transform_indices = @transform_1, window_bounds = array<i64: 128, 256>}, {pipeline_mode = #tpu.pipeline_mode<synchronous>, transform_indices = @transform_2, window_bounds = array<i64: 1, 256>}, {pipeline_mode = #tpu.pipeline_mode<synchronous>, transform_indices = @transform_3, window_bounds = array<i64: 256, 256>}, {pipeline_mode = #tpu.pipeline_mode<synchronous>, transform_indices = @transform_4, window_bounds = array<i64: 1, 256>}, {transform_indices = @transform_5, window_bounds = array<i64: 1, 256>}]} {
    %c0 = arith.constant 0 : index
    %c0_0 = arith.constant 0 : index
    %0 = vector.load %arg1[%c0, %c0_0] : memref<1x128xf32, #tpu.memory_space<vmem>>, vector<1x128xf32>
    %c0_1 = arith.constant 0 : index
    %c0_2 = arith.constant 0 : index
    %1 = vector.load %arg2[%c0_1, %c0_2] : memref<128x256xf32, #tpu.memory_space<vmem>>, vector<128x256xf32>
    %cst = arith.constant dense<0.000000e+00> : vector<1x256xf32>
    %2 = tpu.matmul %0, %1, %cst {dimension_numbers = #tpu.dot_dimension_numbers<[1], [0], [0], [1], [0, 0, 1, 1], [], []>} : vector<1x128xf32>, vector<128x256xf32>, vector<1x256xf32> -> vector<1x256xf32>
    %c0_3 = arith.constant 0 : index
    %c0_4 = arith.constant 0 : index
    %3 = vector.load %arg3[%c0_3, %c0_4] : memref<1x256xf32, #tpu.memory_space<vmem>>, vector<1x256xf32>
    %4 = arith.addf %2, %3 : vector<1x256xf32>
    %cst_5 = arith.constant 0.000000e+00 : f32
    %5 = vector.broadcast %cst_5 : f32 to vector<1x256xf32>
    %6 = arith.maximumf %4, %5 : vector<1x256xf32>
    %c0_6 = arith.constant 0 : index
    %c0_7 = arith.constant 0 : index
    %7 = vector.load %arg4[%c0_6, %c0_7] : memref<256x256xf32, #tpu.memory_space<vmem>>, vector<256x256xf32>
    %cst_8 = arith.constant dense<0.000000e+00> : vector<1x256xf32>
    %8 = tpu.matmul %6, %7, %cst_8 {dimension_numbers = #tpu.dot_dimension_numbers<[1], [0], [0], [1], [0, 0, 1, 1], [], []>} : vector<1x256xf32>, vector<256x256xf32>, vector<1x256xf32> -> vector<1x256xf32>
    %c0_9 = arith.constant 0 : index
    %c0_10 = arith.constant 0 : index
    %9 = vector.load %arg5[%c0_9, %c0_10] : memref<1x256xf32, #tpu.memory_space<vmem>>, vector<1x256xf32>
    %10 = arith.addf %8, %9 : vector<1x256xf32>
    %c0_11 = arith.constant 0 : index
    %c0_12 = arith.constant 0 : index
    %11 = vector.load %arg6[%c0_11, %c0_12] : memref<1x256xf32, #tpu.memory_space<vmem>>, vector<1x256xf32>
    tpu.vector_store %arg6[%c0_11, %c0_12], %10 {strides = array<i32>} : memref<1x256xf32, #tpu.memory_space<vmem>>, vector<1x256xf32>,
    return
  }
  func.func @transform_0(%arg0: i32) -> (i32, i32) {
    %c0_i32 = arith.constant 0 : i32
    %c0_i32_0 = arith.constant 0 : i32
    return %arg0, %c0_i32 : i32, i32
  }
  func.func @transform_1(%arg0: i32) -> (i32, i32) {
    %c0_i32 = arith.constant 0 : i32
    %c0_i32_0 = arith.constant 0 : i32
    %c0_i32_1 = arith.constant 0 : i32
    return %c0_i32, %c0_i32_0 : i32, i32
  }
  func.func @transform_2(%arg0: i32) -> (i32, i32) {
    %c0_i32 = arith.constant 0 : i32
    %c0_i32_0 = arith.constant 0 : i32
    %c0_i32_1 = arith.constant 0 : i32
    return %c0_i32, %c0_i32_0 : i32, i32
  }
  func.func @transform_3(%arg0: i32) -> (i32, i32) {
    %c0_i32 = arith.constant 0 : i32
    %c0_i32_0 = arith.constant 0 : i32
    %c0_i32_1 = arith.constant 0 : i32
    return %c0_i32, %c0_i32_0 : i32, i32
  }
  func.func @transform_4(%arg0: i32) -> (i32, i32) {
    %c0_i32 = arith.constant 0 : i32
    %c0_i32_0 = arith.constant 0 : i32
    %c0_i32_1 = arith.constant 0 : i32
    return %c0_i32, %c0_i32_0 : i32, i32
  }
  func.func @transform_5(%arg0: i32) -> (i32, i32) {
    %c0_i32 = arith.constant 0 : i32
    %c0_i32_0 = arith.constant 0 : i32
    return %arg0, %c0_i32 : i32, i32
  }
}

</mosaic_0001>

<bundles_post_ra>
// kernel: _encode_pair.3
= control target key start
LH: loop header
LB: loop body
LE: loop exit
PB: predicated region body
PF: predicated region fallthrough
CT: control target
= control target key end

     0   :  { %v1183_v3 = vmov 0.0   ;;  %s2221_s1 = inlined_call_operand.vmem [shape: f32[128,512], index: 1, kind: input, shape index: {}]   ;;  %s2222_s3 = inlined_call_operand.vmem [shape: f32[512,512], index: 3, kind: input, shape index: {}]   ;;  %s2223_s0 = inlined_call_operand.vmem [shape: f32[1,128], index: 0, kind: input, shape index: {}]   ;;  %s2224_s2 = inlined_call_operand.vmem [shape: f32[1,512], index: 2, kind: input, shape index: {}]   ;;  %s2225_s4 = inlined_call_operand.vmem [shape: f32[1,512], index: 4, kind: input, shape index: {}]   ;;  %s2226_s5 = inlined_call_operand.vmem [shape: f32[1,512], index: 5, kind: output, shape index: {}]  }
   0x1   :  { %v22_v0 = vld [vmem:[%s2221_s1 + $0x8] sm:$0xff]  ;;  %v21_v2 = vld [vmem:[%s2221_s1] sm:$0xff]  ;;  %171 = vmatprep.mubr.f32.mxu0 %v1183_v3  ;;  %242 = vmatprep.mubr.f32.mxu1 %v1183_v3  ;;  %v24_v28 = vld [vmem:[%s2221_s1 + $0x18] sm:$0xff] }
   0x2   :  { %v26_v1 = vld [vmem:[%s2221_s1 + $0x28] sm:$0xff]  ;;  %v25_v5 = vld [vmem:[%s2221_s1 + $0x20] sm:$0xff]  ;;  %v28_v29 = vld [vmem:[%s2221_s1 + $0x38] sm:$0xff] }
   0x3   :  { %v853_v4 = vpack.c.bf16 %v26_v1, %v22_v0  ;;  %v30_v6 = vld [vmem:[%s2221_s1 + $0x48] sm:$0xff]  ;;  %v855_v8 = vpack.c.bf16 %v25_v5, %v21_v2  ;;  %v29_v10 = vld [vmem:[%s2221_s1 + $0x40] sm:$0xff]  ;;  %v23_v30 = vld [vmem:[%s2221_s1 + $0x10] sm:$0xff]  ;;  %v885_v32 = vpack.c.bf16 %v28_v29, %v24_v28 }
   0x4   :  { %v34_v7 = vld [vmem:[%s2221_s1 + $0x68] sm:$0xff]  ;;  %v33_v11 = vld [vmem:[%s2221_s1 + $0x60] sm:$0xff]  ;;  %v27_v33 = vld [vmem:[%s2221_s1 + $0x30] sm:$0xff] }
   0x5   :  { %v857_v9 = vpack.c.bf16 %v34_v7, %v30_v6  ;;  %v38_v12 = vld [vmem:[%s2221_s1 + $0x88] sm:$0xff]  ;;  %854 = vmatprep.subr.bf16.mxu0 %v853_v4  ;;  %v859_v14 = vpack.c.bf16 %v33_v11, %v29_v10  ;;  %v37_v16 = vld [vmem:[%s2221_s1 + $0x80] sm:$0xff]  ;;  %v32_v34 = vld [vmem:[%s2221_s1 + $0x58] sm:$0xff]  ;;  %v887_v37 = vpack.c.bf16 %v27_v33, %v23_v30  ;;  %886 = vmatprep.subr.bf16.mxu1 %v885_v32 }
   0x6   :  { %v42_v13 = vld [vmem:[%s2221_s1 + $0xa8] sm:$0xff]  ;;  %856 = vmatpush1.bf16.msra.mxu0 %v855_v8  ;;  %v41_v17 = vld [vmem:[%s2221_s1 + $0xa0] sm:$0xff]  ;;  %v36_v35 = vld [vmem:[%s2221_s1 + $0x78] sm:$0xff] }
   0x7   :  { %858 = vmatprep.subr.bf16.mxu0 %v857_v9  ;;  %v861_v15 = vpack.c.bf16 %v42_v13, %v38_v12  ;;  %v46_v18 = vld [vmem:[%s2221_s1 + $0xc8] sm:$0xff]  ;;  %v863_v20 = vpack.c.bf16 %v41_v17, %v37_v16  ;;  %v45_v22 = vld [vmem:[%s2221_s1 + $0xc0] sm:$0xff]  ;;  %v889_v38 = vpack.c.bf16 %v36_v35, %v32_v34  ;;  %v31_v39 = vld [vmem:[%s2221_s1 + $0x50] sm:$0xff]  ;;  %888 = vmatpush1.bf16.msra.mxu1 %v887_v37 }
   0x8   :  { %v50_v19 = vld [vmem:[%s2221_s1 + $0xe8] sm:$0xff]  ;;  %v49_v23 = vld [vmem:[%s2221_s1 + $0xe0] sm:$0xff]  ;;  %v35_v40 = vld [vmem:[%s2221_s1 + $0x70] sm:$0xff] }
   0x9   :  { %v865_v21 = vpack.c.bf16 %v50_v19, %v46_v18  ;;  %v54_v24 = vld [vmem:[%s2221_s1 + $0x108] sm:$0xff]  ;;  %v53_v26 = vld [vmem:[%s2221_s1 + $0x100] sm:$0xff]  ;;  %v867_v31 = vpack.c.bf16 %v49_v23, %v45_v22  ;;  %v40_v41 = vld [vmem:[%s2221_s1 + $0x98] sm:$0xff]  ;;  %v891_v45 = vpack.c.bf16 %v35_v40, %v31_v39  ;;  %890 = vmatprep.subr.bf16.mxu1 %v889_v38 }
   0xa   :  { %860 = vmatpush1.bf16.msra.mxu0 %v859_v14  ;;  %v58_v25 = vld [vmem:[%s2221_s1 + $0x128] sm:$0xff]  ;;  %v57_v27 = vld [vmem:[%s2221_s1 + $0x120] sm:$0xff]  ;;  %v44_v44 = vld [vmem:[%s2221_s1 + $0xb8] sm:$0xff] }
   0xb   :  { %862 = vmatprep.subr.bf16.mxu0 %v861_v15  ;;  %v869_v36 = vpack.c.bf16 %v58_v25, %v54_v24  ;;  %v62_v42 = vld [vmem:[%s2221_s1 + $0x148] sm:$0xff]  ;;  %v871_v46 = vpack.c.bf16 %v57_v27, %v53_v26  ;;  %v61_v47 = vld [vmem:[%s2221_s1 + $0x140] sm:$0xff]  ;;  %v893_v48 = vpack.c.bf16 %v44_v44, %v40_v41  ;;  %v39_v49 = vld [vmem:[%s2221_s1 + $0x90] sm:$0xff]  ;;  %892 = vmatpush1.bf16.msra.mxu1 %v891_v45 }
   0xc   :  { %v66_v43 = vld [vmem:[%s2221_s1 + $0x168] sm:$0xff]  ;;  %v43_v50 = vld [vmem:[%s2221_s1 + $0xb0] sm:$0xff]  ;;  %v65_v52 = vld [vmem:[%s2221_s1 + $0x160] sm:$0xff] }
   0xd   :  { %v873_v51 = vpack.c.bf16 %v66_v43, %v62_v42  ;;  %v48_v53 = vld [vmem:[%s2221_s1 + $0xd8] sm:$0xff]  ;;  %v70_v55 = vld [vmem:[%s2221_s1 + $0x188] sm:$0xff]  ;;  %v895_v57 = vpack.c.bf16 %v43_v50, %v39_v49  ;;  %v875_v58 = vpack.c.bf16 %v65_v52, %v61_v47  ;;  %v69_v59 = vld [vmem:[%s2221_s1 + $0x180] sm:$0xff]  ;;  %894 = vmatprep.subr.bf16.mxu1 %v893_v48 }
   0xe   :  { %864 = vmatpush1.bf16.msra.mxu0 %v863_v20  ;;  %v52_v54 = vld [vmem:[%s2221_s1 + $0xf8] sm:$0xff]  ;;  %v74_v56 = vld [vmem:[%s2221_s1 + $0x1a8] sm:$0xff]  ;;  %v47_v61 = vld [vmem:[%s2221_s1 + $0xd0] sm:$0xff] }
   0xf   :  { %866 = vmatprep.subr.bf16.mxu0 %v865_v21  ;;  %v897_v60 = vpack.c.bf16 %v52_v54, %v48_v53  ;;  %v51_v62 = vld [vmem:[%s2221_s1 + $0xf0] sm:$0xff]  ;;  %v877_v63 = vpack.c.bf16 %v74_v56, %v70_v55  ;;  %v73_v0 = vld [vmem:[%s2221_s1 + $0x1a0] sm:$0xff]  ;;  %v56_v1 = vld [vmem:[%s2221_s1 + $0x118] sm:$0xff]  ;;  %896 = vmatpush1.bf16.msra.mxu1 %v895_v57 }
  0x10   :  { %v60_v2 = vld [vmem:[%s2221_s1 + $0x138] sm:$0xff]  ;;  %v78_v3 = vld [vmem:[%s2221_s1 + $0x1c8] sm:$0xff]  ;;  %v899_v5 = vpack.c.bf16 %v51_v62, %v47_v61  ;;  %v879_v6 = vpack.c.bf16 %v73_v0, %v69_v59  ;;  %v77_v7 = vld [vmem:[%s2221_s1 + $0x1c0] sm:$0xff] }
  0x11   :  { %v82_v4 = vld [vmem:[%s2221_s1 + $0x1e8] sm:$0xff]  ;;  %898 = vmatprep.subr.bf16.mxu1 %v897_v60  ;;  %v901_v8 = vpack.c.bf16 %v60_v2, %v56_v1  ;;  %v55_v9 = vld [vmem:[%s2221_s1 + $0x110] sm:$0xff]  ;;  %v81_v12 = vld [vmem:[%s2221_s1 + $0x1e0] sm:$0xff] }
  0x12   :  { %868 = vmatpush1.bf16.msra.mxu0 %v867_v31  ;;  %v59_v10 = vld [vmem:[%s2221_s1 + $0x130] sm:$0xff]  ;;  %v881_v11 = vpack.c.bf16 %v82_v4, %v78_v3  ;;  %v64_v13 = vld [vmem:[%s2221_s1 + $0x158] sm:$0xff]  ;;  %v254_v15 = vld [vmem:[%s2222_s3 + $0x8] sm:$0xff]  ;;  %v883_v18 = vpack.c.bf16 %v81_v12, %v77_v7 }
  0x13   :  { %870 = vmatprep.subr.bf16.mxu0 %v869_v36  ;;  %v68_v14 = vld [vmem:[%s2221_s1 + $0x178] sm:$0xff]  ;;  %v258_v16 = vld [vmem:[%s2222_s3 + $0x28] sm:$0xff]  ;;  %900 = vmatpush1.bf16.msra.mxu1 %v899_v5  ;;  %v903_v17 = vpack.c.bf16 %v59_v10, %v55_v9  ;;  %v63_v20 = vld [vmem:[%s2221_s1 + $0x150] sm:$0xff] }
  0x14   :  { %902 = vmatprep.subr.bf16.mxu1 %v901_v8  ;;  %v905_v19 = vpack.c.bf16 %v68_v14, %v64_v13  ;;  %v67_v21 = vld [vmem:[%s2221_s1 + $0x170] sm:$0xff]  ;;  %v72_v22 = vld [vmem:[%s2221_s1 + $0x198] sm:$0xff]  ;;  %v917_v24 = vpack.c.bf16 %v258_v16, %v254_v15  ;;  %v253_v25 = vld [vmem:[%s2222_s3] sm:$0xff] }
  0x15   :  { %v76_v23 = vld [vmem:[%s2221_s1 + $0x1b8] sm:$0xff]  ;;  %v257_v26 = vld [vmem:[%s2222_s3 + $0x20] sm:$0xff]  ;;  %v262_v27 = vld [vmem:[%s2222_s3 + $0x48] sm:$0xff]  ;;  %v907_v30 = vpack.c.bf16 %v67_v21, %v63_v20 }
  0x16   :  { %872 = vmatpush1.bf16.msra.mxu0 %v871_v46  ;;  %v266_v28 = vld [vmem:[%s2222_s3 + $0x68] sm:$0xff]  ;;  %v1410_v29 = vld [vmem:[%s2223_s0] sm:$0x1]  ;;  %v909_v31 = vpack.c.bf16 %v76_v23, %v72_v22  ;;  %v71_v32 = vld [vmem:[%s2221_s1 + $0x190] sm:$0xff]  ;;  %v919_v35 = vpack.c.bf16 %v257_v26, %v253_v25 }
  0x17   :  { %874 = vmatprep.subr.bf16.mxu0 %v873_v51  ;;  %904 = vmatpush1.bf16.msra.mxu1 %v903_v17  ;;  %v75_v33 = vld [vmem:[%s2221_s1 + $0x1b0] sm:$0xff]  ;;  %v80_v34 = vld [vmem:[%s2221_s1 + $0x1d8] sm:$0xff]  ;;  %v921_v37 = vpack.c.bf16 %v266_v28, %v262_v27  ;;  %v261_v38 = vld [vmem:[%s2222_s3 + $0x40] sm:$0xff] }
  0x18   :  { %906 = vmatprep.subr.bf16.mxu1 %v905_v19  ;;  %v84_v36 = vld [vmem:[%s2221_s1 + $0x1f8] sm:$0xff]  ;;  %v265_v39 = vld [vmem:[%s2222_s3 + $0x60] sm:$0xff]  ;;  %v270_v40 = vld [vmem:[%s2222_s3 + $0x88] sm:$0xff]  ;;  %v911_v42 = vpack.c.bf16 %v75_v33, %v71_v32 }
  0x19   :  { %v274_v41 = vld [vmem:[%s2222_s3 + $0xa8] sm:$0xff]  ;;  %v913_v43 = vpack.c.bf16 %v84_v36, %v80_v34  ;;  %v79_v44 = vld [vmem:[%s2221_s1 + $0x1d0] sm:$0xff]  ;;  %v256_v46 = vld [vmem:[%s2222_s3 + $0x18] sm:$0xff]  ;;  %v923_v47 = vpack.c.bf16 %v265_v39, %v261_v38 }
  0x1a   :  { %876 = vmatpush1.bf16.msra.mxu0 %v875_v58  ;;  %v83_v45 = vld [vmem:[%s2221_s1 + $0x1f0] sm:$0xff]  ;;  %v260_v48 = vld [vmem:[%s2222_s3 + $0x38] sm:$0xff]  ;;  %v925_v49 = vpack.c.bf16 %v274_v41, %v270_v40  ;;  %v269_v50 = vld [vmem:[%s2222_s3 + $0x80] sm:$0xff] }
  0x1b   :  { %878 = vmatprep.subr.bf16.mxu0 %v877_v63  ;;  %908 = vmatpush1.bf16.msra.mxu1 %v907_v30  ;;  %v273_v51 = vld [vmem:[%s2222_s3 + $0xa0] sm:$0xff]  ;;  %v278_v52 = vld [vmem:[%s2222_s3 + $0xc8] sm:$0xff]  ;;  %v915_v54 = vpack.c.bf16 %v83_v45, %v79_v44  ;;  %v1045_v55 = vpack.c.bf16 %v260_v48, %v256_v46  ;;  %v255_v56 = vld [vmem:[%s2222_s3 + $0x10] sm:$0xff] }
  0x1c   :  { %910 = vmatprep.subr.bf16.mxu1 %v909_v31  ;;  %v282_v53 = vld [vmem:[%s2222_s3 + $0xe8] sm:$0xff]  ;;  %v259_v57 = vld [vmem:[%s2222_s3 + $0x30] sm:$0xff]  ;;  %v264_v58 = vld [vmem:[%s2222_s3 + $0x58] sm:$0xff]  ;;  %v927_v59 = vpack.c.bf16 %v273_v51, %v269_v50 }
  0x1d   :  { %v268_v60 = vld [vmem:[%s2222_s3 + $0x78] sm:$0xff]  ;;  %v929_v61 = vpack.c.bf16 %v282_v53, %v278_v52  ;;  %v277_v62 = vld [vmem:[%s2222_s3 + $0xc0] sm:$0xff]  ;;  %v286_v0 = vld [vmem:[%s2222_s3 + $0x108] sm:$0xff]  ;;  %v1047_v2 = vpack.c.bf16 %v259_v57, %v255_v56 }
  0x1e   :  { %880 = vmatpush1.bf16.msra.mxu0 %v879_v6  ;;  %v281_v63 = vld [vmem:[%s2222_s3 + $0xe0] sm:$0xff]  ;;  %v290_v1 = vld [vmem:[%s2222_s3 + $0x128] sm:$0xff]  ;;  %v1049_v3 = vpack.c.bf16 %v268_v60, %v264_v58  ;;  %v263_v4 = vld [vmem:[%s2222_s3 + $0x50] sm:$0xff] }
  0x1f   :  { %882 = vmatprep.subr.bf16.mxu0 %v881_v11  ;;  %912 = vmatpush1.bf16.msra.mxu1 %v911_v42  ;;  %v267_v5 = vld [vmem:[%s2222_s3 + $0x70] sm:$0xff]  ;;  %v272_v6 = vld [vmem:[%s2222_s3 + $0x98] sm:$0xff]  ;;  %v931_v7 = vpack.c.bf16 %v281_v63, %v277_v62  ;;  %v933_v9 = vpack.c.bf16 %v290_v1, %v286_v0  ;;  %v285_v10 = vld [vmem:[%s2222_s3 + $0x100] sm:$0xff] }
  0x20   :  { %914 = vmatprep.subr.bf16.mxu1 %v913_v43  ;;  %v276_v8 = vld [vmem:[%s2222_s3 + $0xb8] sm:$0xff]  ;;  %v289_v11 = vld [vmem:[%s2222_s3 + $0x120] sm:$0xff]  ;;  %v294_v12 = vld [vmem:[%s2222_s3 + $0x148] sm:$0xff]  ;;  %v1051_v14 = vpack.c.bf16 %v267_v5, %v263_v4 }
  0x21   :  { %v298_v13 = vld [vmem:[%s2222_s3 + $0x168] sm:$0xff]  ;;  %v1053_v15 = vpack.c.bf16 %v276_v8, %v272_v6  ;;  %v271_v16 = vld [vmem:[%s2222_s3 + $0x90] sm:$0xff]  ;;  %v935_v19 = vpack.c.bf16 %v289_v11, %v285_v10  ;;  %v284_v20 = vld [vmem:[%s2222_s3 + $0xf8] sm:$0xff] }
  0x22   :  { %884 = vmatpush1.bf16.msra.mxu0 %v883_v18  ;;  %v275_v17 = vld [vmem:[%s2222_s3 + $0xb0] sm:$0xff]  ;;  %v280_v18 = vld [vmem:[%s2222_s3 + $0xd8] sm:$0xff]  ;;  %v937_v21 = vpack.c.bf16 %v298_v13, %v294_v12  ;;  %v293_v22 = vld [vmem:[%s2222_s3 + $0x140] sm:$0xff] }
  0x23   :  { %918 = vmatprep.subr.bf16.mxu0 %v917_v24  ;;  %916 = vmatpush1.bf16.msra.mxu1 %v915_v54  ;;  %v297_v23 = vld [vmem:[%s2222_s3 + $0x160] sm:$0xff]  ;;  %v302_v24 = vld [vmem:[%s2222_s3 + $0x188] sm:$0xff]  ;;  %v1055_v26 = vpack.c.bf16 %v275_v17, %v271_v16  ;;  %v1057_v27 = vpack.c.bf16 %v284_v20, %v280_v18  ;;  %v279_v28 = vld [vmem:[%s2222_s3 + $0xd0] sm:$0xff] }
  0x24   :  { %1046 = vmatprep.subr.bf16.mxu1 %v1045_v55  ;;  %v306_v25 = vld [vmem:[%s2222_s3 + $0x1a8] sm:$0xff]  ;;  %v288_v30 = vld [vmem:[%s2222_s3 + $0x118] sm:$0xff]  ;;  %v939_v31 = vpack.c.bf16 %v297_v23, %v293_v22  ;;  %v301_v34 = vld [vmem:[%s2222_s3 + $0x180] sm:$0xff] }
  0x25   :  { %172 = vmatmul.mubr.f32.vlgmr.msra.gmra.mrb[0].mxu0 %v1410_v29  ;;  %v292_v32 = vld [vmem:[%s2222_s3 + $0x138] sm:$0xff]  ;;  %v941_v33 = vpack.c.bf16 %v306_v25, %v302_v24  ;;  %v310_v36 = vld [vmem:[%s2222_s3 + $0x1c8] sm:$0xff]  ;;  %v287_v40 = vld [vmem:[%s2222_s3 + $0x110] sm:$0xff] }
  0x26   :  { %920 = vmatpush1.bf16.msra.mxu0 %v919_v35  ;;  %243 = vmatmul.mubr.f32.vlgmr.msra.gmra.mrb[0].mxu1 %v1410_v29  ;;  %v283_v29 = vld [vmem:[%s2222_s3 + $0xf0] sm:$0xff]  ;;  %v305_v35 = vld [vmem:[%s2222_s3 + $0x1a0] sm:$0xff]  ;;  %v1061_v39 = vpack.c.bf16 %v292_v32, %v288_v30  ;;  %v296_v42 = vld [vmem:[%s2222_s3 + $0x158] sm:$0xff] }
  0x27   :  { %922 = vmatprep.subr.bf16.mxu0 %v921_v37  ;;  %1048 = vmatpush1.bf16.msra.mxu1 %v1047_v2  ;;  %v314_v37 = vld [vmem:[%s2222_s3 + $0x1e8] sm:$0xff]  ;;  %v1059_v38 = vpack.c.bf16 %v283_v29, %v279_v28  ;;  %v291_v41 = vld [vmem:[%s2222_s3 + $0x130] sm:$0xff]  ;;  %v943_v43 = vpack.c.bf16 %v305_v35, %v301_v34  ;;  %v300_v44 = vld [vmem:[%s2222_s3 + $0x178] sm:$0xff] }
  0x28   :  { %1050 = vmatprep.subr.bf16.mxu1 %v1049_v3  ;;  %v945_v45 = vpack.c.bf16 %v314_v37, %v310_v36  ;;  %v309_v46 = vld [vmem:[%s2222_s3 + $0x1c0] sm:$0xff]  ;;  %v318_v48 = vld [vmem:[%s2222_s3 + $0x208] sm:$0xff]  ;;  %v1063_v50 = vpack.c.bf16 %v291_v41, %v287_v40  ;;  %v1065_v51 = vpack.c.bf16 %v300_v44, %v296_v42  ;;  %v295_v52 = vld [vmem:[%s2222_s3 + $0x150] sm:$0xff] }
  0x29   :  { %v299_v53 = vld [vmem:[%s2222_s3 + $0x170] sm:$0xff]  ;;  %v304_v54 = vld [vmem:[%s2222_s3 + $0x198] sm:$0xff]  ;;  %v317_v58 = vld [vmem:[%s2222_s3 + $0x200] sm:$0xff] }
  0x2a   :  { %924 = vmatpush1.bf16.msra.mxu0 %v923_v47  ;;  %v313_v47 = vld [vmem:[%s2222_s3 + $0x1e0] sm:$0xff]  ;;  %v308_v56 = vld [vmem:[%s2222_s3 + $0x1b8] sm:$0xff]  ;;  %v326_v60 = vld [vmem:[%s2222_s3 + $0x248] sm:$0xff]  ;;  %v1067_v62 = vpack.c.bf16 %v299_v53, %v295_v52 }
  0x2b   :  { %926 = vmatprep.subr.bf16.mxu0 %v925_v49  ;;  %1052 = vmatpush1.bf16.msra.mxu1 %v1051_v14  ;;  %v322_v49 = vld [vmem:[%s2222_s3 + $0x228] sm:$0xff]  ;;  %v947_v55 = vpack.c.bf16 %v313_v47, %v309_v46  ;;  %v1069_v63 = vpack.c.bf16 %v308_v56, %v304_v54  ;;  %v303_v0 = vld [vmem:[%s2222_s3 + $0x190] sm:$0xff]  ;;  %v312_v2 = vld [vmem:[%s2222_s3 + $0x1d8] sm:$0xff] }
  0x2c   :  { %1054 = vmatprep.subr.bf16.mxu1 %v1053_v15  ;;  %v949_v57 = vpack.c.bf16 %v322_v49, %v318_v48  ;;  %v307_v1 = vld [vmem:[%s2222_s3 + $0x1b0] sm:$0xff]  ;;  %v316_v4 = vld [vmem:[%s2222_s3 + $0x1f8] sm:$0xff]  ;;  %v325_v6 = vld [vmem:[%s2222_s3 + $0x240] sm:$0xff] }
  0x2d   :  { %v334_v8 = vld [vmem:[%s2222_s3 + $0x288] sm:$0xff]  ;;  %v1071_v10 = vpack.c.bf16 %v307_v1, %v303_v0  ;;  %v1073_v11 = vpack.c.bf16 %v316_v4, %v312_v2  ;;  %v311_v12 = vld [vmem:[%s2222_s3 + $0x1d0] sm:$0xff]  ;;  %v320_v14 = vld [vmem:[%s2222_s3 + $0x218] sm:$0xff] }
  0x2e   :  { %928 = vmatpush1.bf16.msra.mxu0 %v927_v59  ;;  %v321_v59 = vld [vmem:[%s2222_s3 + $0x220] sm:$0xff]  ;;  %v315_v13 = vld [vmem:[%s2222_s3 + $0x1f0] sm:$0xff]  ;;  %v324_v16 = vld [vmem:[%s2222_s3 + $0x238] sm:$0xff] }
  0x2f   :  { %930 = vmatprep.subr.bf16.mxu0 %v929_v61  ;;  %1056 = vmatpush1.bf16.msra.mxu1 %v1055_v26  ;;  %v330_v61 = vld [vmem:[%s2222_s3 + $0x268] sm:$0xff]  ;;  %v951_v3 = vpack.c.bf16 %v321_v59, %v317_v58  ;;  %v333_v18 = vld [vmem:[%s2222_s3 + $0x280] sm:$0xff]  ;;  %v1075_v22 = vpack.c.bf16 %v315_v13, %v311_v12  ;;  %v1077_v23 = vpack.c.bf16 %v324_v16, %v320_v14  ;;  %v319_v24 = vld [vmem:[%s2222_s3 + $0x210] sm:$0xff] }
  0x30   :  { %1058 = vmatprep.subr.bf16.mxu1 %v1057_v27  ;;  %v953_v5 = vpack.c.bf16 %v330_v61, %v326_v60  ;;  %v342_v20 = vld [vmem:[%s2222_s3 + $0x2c8] sm:$0xff]  ;;  %v323_v25 = vld [vmem:[%s2222_s3 + $0x230] sm:$0xff]  ;;  %v328_v26 = vld [vmem:[%s2222_s3 + $0x258] sm:$0xff] }
  0x31   :  { %v332_v28 = vld [vmem:[%s2222_s3 + $0x278] sm:$0xff]  ;;  %v341_v30 = vld [vmem:[%s2222_s3 + $0x2c0] sm:$0xff]  ;;  %v350_v32 = vld [vmem:[%s2222_s3 + $0x308] sm:$0xff]  ;;  %v1079_v34 = vpack.c.bf16 %v323_v25, %v319_v24 }
  0x32   :  { %932 = vmatpush1.bf16.msra.mxu0 %v931_v7  ;;  %v329_v7 = vld [vmem:[%s2222_s3 + $0x260] sm:$0xff]  ;;  %v1081_v35 = vpack.c.bf16 %v332_v28, %v328_v26  ;;  %v327_v36 = vld [vmem:[%s2222_s3 + $0x250] sm:$0xff]  ;;  %v340_v40 = vld [vmem:[%s2222_s3 + $0x2b8] sm:$0xff] }
  0x33   :  { %934 = vmatprep.subr.bf16.mxu0 %v933_v9  ;;  %1060 = vmatpush1.bf16.msra.mxu1 %v1059_v38  ;;  %v338_v9 = vld [vmem:[%s2222_s3 + $0x2a8] sm:$0xff]  ;;  %v955_v15 = vpack.c.bf16 %v329_v7, %v325_v6  ;;  %v331_v37 = vld [vmem:[%s2222_s3 + $0x270] sm:$0xff]  ;;  %v336_v38 = vld [vmem:[%s2222_s3 + $0x298] sm:$0xff] }
  0x34   :  { %1062 = vmatprep.subr.bf16.mxu1 %v1061_v39  ;;  %v957_v17 = vpack.c.bf16 %v338_v9, %v334_v8  ;;  %v349_v42 = vld [vmem:[%s2222_s3 + $0x300] sm:$0xff]  ;;  %v358_v44 = vld [vmem:[%s2222_s3 + $0x348] sm:$0xff]  ;;  %v1083_v46 = vpack.c.bf16 %v331_v37, %v327_v36  ;;  %v1085_v47 = vpack.c.bf16 %v340_v40, %v336_v38  ;;  %v335_v48 = vld [vmem:[%s2222_s3 + $0x290] sm:$0xff]  ;;  %v87_v40 = vlaneseq }
  0x35   :  { %v339_v49 = vld [vmem:[%s2222_s3 + $0x2b0] sm:$0xff]  ;;  %v348_v52 = vld [vmem:[%s2222_s3 + $0x2f8] sm:$0xff]  ;;  %v357_v54 = vld [vmem:[%s2222_s3 + $0x340] sm:$0xff] }
  0x36   :  { %936 = vmatpush1.bf16.msra.mxu0 %v935_v19  ;;  %v337_v19 = vld [vmem:[%s2222_s3 + $0x2a0] sm:$0xff]  ;;  %v366_v56 = vld [vmem:[%s2222_s3 + $0x388] sm:$0xff]  ;;  %v1087_v58 = vpack.c.bf16 %v339_v49, %v335_v48  ;;  %v343_v60 = vld [vmem:[%s2222_s3 + $0x2d0] sm:$0xff]  ;;  %vm846_vm0 = vcmp.lt.s32.totalorder %v87_v40, 512 }
  0x37   :  { %938 = vmatprep.subr.bf16.mxu0 %v937_v21  ;;  %1064 = vmatpush1.bf16.msra.mxu1 %v1063_v50  ;;  %v346_v21 = vld [vmem:[%s2222_s3 + $0x2e8] sm:$0xff]  ;;  %v959_v27 = vpack.c.bf16 %v337_v19, %v333_v18  ;;  %v344_v50 = vld [vmem:[%s2222_s3 + $0x2d8] sm:$0xff]  ;;  %v347_v61 = vld [vmem:[%s2222_s3 + $0x2f0] sm:$0xff] }
  0x38   :  { %1066 = vmatprep.subr.bf16.mxu1 %v1065_v51  ;;  %v961_v29 = vpack.c.bf16 %v346_v21, %v342_v20  ;;  %v1089_v59 = vpack.c.bf16 %v348_v52, %v344_v50  ;;  %v356_v0 = vld [vmem:[%s2222_s3 + $0x338] sm:$0xff]  ;;  %v365_v2 = vld [vmem:[%s2222_s3 + $0x380] sm:$0xff]  ;;  %v1091_v4 = vpack.c.bf16 %v347_v61, %v343_v60  ;;  %v351_v6 = vld [vmem:[%s2222_s3 + $0x310] sm:$0xff] }
  0x39   :  { %v355_v7 = vld [vmem:[%s2222_s3 + $0x330] sm:$0xff]  ;;  %v360_v9 = vld [vmem:[%s2222_s3 + $0x358] sm:$0xff]  ;;  %v377_v28 = vld [vmem:[%s2222_s3 + $0x3e0] sm:$0xff] }
  0x3a   :  { %940 = vmatpush1.bf16.msra.mxu0 %v939_v31  ;;  %v345_v31 = vld [vmem:[%s2222_s3 + $0x2e0] sm:$0xff]  ;;  %v359_v13 = vld [vmem:[%s2222_s3 + $0x350] sm:$0xff]  ;;  %v372_v16 = vld [vmem:[%s2222_s3 + $0x3b8] sm:$0xff] }
  0x3b   :  { %942 = vmatprep.subr.bf16.mxu0 %v941_v33  ;;  %1068 = vmatpush1.bf16.msra.mxu1 %v1067_v62  ;;  %v354_v33 = vld [vmem:[%s2222_s3 + $0x328] sm:$0xff]  ;;  %v963_v39 = vpack.c.bf16 %v345_v31, %v341_v30  ;;  %v352_v62 = vld [vmem:[%s2222_s3 + $0x318] sm:$0xff]  ;;  %v363_v14 = vld [vmem:[%s2222_s3 + $0x370] sm:$0xff] }
  0x3c   :  { %1070 = vmatprep.subr.bf16.mxu1 %v1069_v63  ;;  %v965_v41 = vpack.c.bf16 %v354_v33, %v350_v32  ;;  %v367_v19 = vld [vmem:[%s2222_s3 + $0x390] sm:$0xff]  ;;  %v376_v24 = vld [vmem:[%s2222_s3 + $0x3d8] sm:$0xff]  ;;  %v381_v48 = vld [vmem:[%s2222_s3 + $0x400] sm:$0xff] }
  0x3d   :  { %v371_v20 = vld [vmem:[%s2222_s3 + $0x3b0] sm:$0xff]  ;;  %v380_v26 = vld [vmem:[%s2222_s3 + $0x3f8] sm:$0xff]  ;;  %v385_v49 = vld [vmem:[%s2222_s3 + $0x420] sm:$0xff] }
  0x3e   :  { %944 = vmatpush1.bf16.msra.mxu0 %v943_v43  ;;  %v353_v43 = vld [vmem:[%s2222_s3 + $0x320] sm:$0xff]  ;;  %v1103_v21 = vpack.c.bf16 %v371_v20, %v367_v19  ;;  %v375_v31 = vld [vmem:[%s2222_s3 + $0x3d0] sm:$0xff]  ;;  %v384_v36 = vld [vmem:[%s2222_s3 + $0x418] sm:$0xff]  ;;  %v983_v60 = vpack.c.bf16 %v385_v49, %v381_v48 }
  0x3f   :  { %946 = vmatprep.subr.bf16.mxu0 %v945_v45  ;;  %1072 = vmatpush1.bf16.msra.mxu1 %v1071_v10  ;;  %v362_v45 = vld [vmem:[%s2222_s3 + $0x368] sm:$0xff]  ;;  %v967_v51 = vpack.c.bf16 %v353_v43, %v349_v42  ;;  %v364_v10 = vld [vmem:[%s2222_s3 + $0x378] sm:$0xff]  ;;  %v379_v32 = vld [vmem:[%s2222_s3 + $0x3f0] sm:$0xff] }
  0x40   :  { %1074 = vmatprep.subr.bf16.mxu1 %v1073_v11  ;;  %v969_v53 = vpack.c.bf16 %v362_v45, %v358_v44  ;;  %v1095_v11 = vpack.c.bf16 %v355_v7, %v351_v6  ;;  %v1097_v12 = vpack.c.bf16 %v364_v10, %v360_v9  ;;  %v1107_v33 = vpack.c.bf16 %v379_v32, %v375_v31  ;;  %v388_v38 = vld [vmem:[%s2222_s3 + $0x438] sm:$0xff]  ;;  %v1817_v43 = vld [vmem:[%s2224_s2] sm:$0xf]  ;;  %v383_v52 = vld [vmem:[%s2222_s3 + $0x410] sm:$0xff] }
  0x41   :  { %v402_v7 = vld [vmem:[%s2222_s3 + $0x4a8] sm:$0xff]  ;;  %v404_v9 = vld [vmem:[%s2222_s3 + $0x4b8] sm:$0xff]  ;;  %v407_v31 = vld [vmem:[%s2222_s3 + $0x4d0] sm:$0xff] }
  0x42   :  { %948 = vmatpush1.bf16.msra.mxu0 %v947_v55  ;;  %v361_v55 = vld [vmem:[%s2222_s3 + $0x360] sm:$0xff]  ;;  %v410_v20 = vld [vmem:[%s2222_s3 + $0x4e8] sm:$0xff]  ;;  %v411_v32 = vld [vmem:[%s2222_s3 + $0x4f0] sm:$0xff] }
  0x43   :  { %950 = vmatprep.subr.bf16.mxu0 %v949_v57  ;;  %1076 = vmatpush1.bf16.msra.mxu1 %v1075_v22  ;;  %v370_v57 = vld [vmem:[%s2222_s3 + $0x3a8] sm:$0xff]  ;;  %v971_v63 = vpack.c.bf16 %v361_v55, %v357_v54 }
  0x44   :  { %1078 = vmatprep.subr.bf16.mxu1 %v1077_v23  ;;  %v973_v1 = vpack.c.bf16 %v370_v57, %v366_v56  ;;  %v374_v22 = vld [vmem:[%s2222_s3 + $0x3c8] sm:$0xff]  ;;  %v392_v57 = vld [vmem:[%s2222_s3 + $0x458] sm:$0xff] }
  0x45   :  { %v378_v23 = vld [vmem:[%s2222_s3 + $0x3e8] sm:$0xff] }
  0x46   :  { %952 = vmatpush1.bf16.msra.mxu0 %v951_v3  ;;  %v369_v3 = vld [vmem:[%s2222_s3 + $0x3a0] sm:$0xff]  ;;  %v977_v25 = vpack.c.bf16 %v378_v23, %v374_v22  ;;  %v390_v54 = vld [vmem:[%s2222_s3 + $0x448] sm:$0xff]  ;;  %v412_v22 = vld [vmem:[%s2222_s3 + $0x4f8] sm:$0xff] }
  0x47   :  { %954 = vmatprep.subr.bf16.mxu0 %v953_v5  ;;  %1080 = vmatpush1.bf16.msra.mxu1 %v1079_v34  ;;  %v1093_v5 = vpack.c.bf16 %v356_v0, %v352_v62  ;;  %v975_v8 = vpack.c.bf16 %v369_v3, %v365_v2  ;;  %v382_v34 = vld [vmem:[%s2222_s3 + $0x408] sm:$0xff]  ;;  %v389_v62 = vld [vmem:[%s2222_s3 + $0x440] sm:$0xff]  ;;  %v391_v3 = vld [vmem:[%s2222_s3 + $0x450] sm:$0xff] }
  0x48   :  { %1082 = vmatprep.subr.bf16.mxu1 %v1081_v35  ;;  %v386_v35 = vld [vmem:[%s2222_s3 + $0x428] sm:$0xff] }
  0x49   :  { %v981_v37 = vpack.c.bf16 %v386_v35, %v382_v34  ;;  %v394_v56 = vld [vmem:[%s2222_s3 + $0x468] sm:$0xff] }
  0x4a   :  { %956 = vmatpush1.bf16.msra.mxu0 %v955_v15  ;;  %v368_v15 = vld [vmem:[%s2222_s3 + $0x398] sm:$0xff]  ;;  %v418_v35 = vld [vmem:[%s2222_s3 + $0x528] sm:$0xff] }
  0x4b   :  { %958 = vmatprep.subr.bf16.mxu0 %v957_v17  ;;  %1084 = vmatpush1.bf16.msra.mxu1 %v1083_v46  ;;  %v1099_v17 = vpack.c.bf16 %v363_v14, %v359_v13  ;;  %v1101_v18 = vpack.c.bf16 %v372_v16, %v368_v15  ;;  %v401_v13 = vld [vmem:[%s2222_s3 + $0x4a0] sm:$0xff]  ;;  %v399_v16 = vld [vmem:[%s2222_s3 + $0x490] sm:$0xff] }
  0x4c   :  { %1086 = vmatprep.subr.bf16.mxu1 %v1085_v47 }
  0x4e   :  { %960 = vmatpush1.bf16.msra.mxu0 %v959_v27  ;;  %v373_v27 = vld [vmem:[%s2222_s3 + $0x3c0] sm:$0xff] }
  0x4f   :  { %962 = vmatprep.subr.bf16.mxu0 %v961_v29  ;;  %1088 = vmatpush1.bf16.msra.mxu1 %v1087_v58  ;;  %v1105_v29 = vpack.c.bf16 %v380_v26, %v376_v24  ;;  %v979_v30 = vpack.c.bf16 %v377_v28, %v373_v27  ;;  %v396_v58 = vld [vmem:[%s2222_s3 + $0x478] sm:$0xff]  ;;  %v405_v26 = vld [vmem:[%s2222_s3 + $0x4c0] sm:$0xff] }
  0x50   :  { %1090 = vmatprep.subr.bf16.mxu1 %v1089_v59  ;;  %v1113_v2 = vpack.c.bf16 %v396_v58, %v392_v57  ;;  %v409_v27 = vld [vmem:[%s2222_s3 + $0x4e0] sm:$0xff] }
  0x51   :  { %v421_v58 = vld [vmem:[%s2222_s3 + $0x540] sm:$0xff] }
  0x52   :  { %964 = vmatpush1.bf16.msra.mxu0 %v963_v39  ;;  %v1109_v39 = vpack.c.bf16 %v388_v38, %v384_v36  ;;  %v416_v36 = vld [vmem:[%s2222_s3 + $0x518] sm:$0xff] }
  0x53   :  { %966 = vmatprep.subr.bf16.mxu0 %v965_v41  ;;  %1092 = vmatpush1.bf16.msra.mxu1 %v1091_v4  ;;  %v1811_v41 = vshrl.u32 %v87_v40, 7  ;;  %v395_v4 = vld [vmem:[%s2222_s3 + $0x470] sm:$0xff] }
  0x54   :  { %1094 = vmatprep.subr.bf16.mxu1 %v1093_v5  ;;  %v398_v5 = vld [vmem:[%s2222_s3 + $0x488] sm:$0xff] }
  0x55   :  { %v89_v42 = vsub.s32 0, %v1811_v41  ;;  %v93_v44 = vsub.s32 1, %v1811_v41  ;;  %v101_v6 = vsub.s32 3, %v1811_v41  ;;  %v989_v14 = vpack.c.bf16 %v402_v7, %v398_v5  ;;  %v429_v7 = vld [vmem:[%s2222_s3 + $0x580] sm:$0xff] }
  0x56   :  { %968 = vmatpush1.bf16.msra.mxu0 %v967_v51 }
  0x57   :  { %970 = vmatprep.subr.bf16.mxu0 %v969_v53  ;;  %1096 = vmatpush1.bf16.msra.mxu1 %v1095_v11  ;;  %v90_v45 = vrot.slane %v1817_v43, %v89_v42  ;;  %v94_v46 = vrot.slane %v1817_v43, %v93_v44  ;;  %v387_v53 = vld [vmem:[%s2222_s3 + $0x430] sm:$0xff]  ;;  %v1115_v11 = vpack.c.bf16 %v395_v4, %v391_v3  ;;  %v436_v3 = vld [vmem:[%s2222_s3 + $0x5b8] sm:$0xff] }
  0x58   :  { %1098 = vmatprep.subr.bf16.mxu1 %v1097_v12  ;;  %v1111_v61 = vpack.c.bf16 %v387_v53, %v383_v52  ;;  %v397_v12 = vld [vmem:[%s2222_s3 + $0x480] sm:$0xff]  ;;  %v102_v19 = vrot.slane %v1817_v43, %v101_v6  ;;  %v422_v52 = vld [vmem:[%s2222_s3 + $0x548] sm:$0xff] }
  0x59   :  { %v991_v24 = vpack.c.bf16 %v401_v13, %v397_v12  ;;  %v426_v53 = vld [vmem:[%s2222_s3 + $0x568] sm:$0xff]  ;;  %v435_v12 = vld [vmem:[%s2222_s3 + $0x5b0] sm:$0xff] }
  0x5a   :  { %972 = vmatpush1.bf16.msra.mxu0 %v971_v63  ;;  %v393_v63 = vld [vmem:[%s2222_s3 + $0x460] sm:$0xff]  ;;  %v438_v13 = vld [vmem:[%s2222_s3 + $0x5c8] sm:$0xff] }
  0x5b   :  { %974 = vmatprep.subr.bf16.mxu0 %v973_v1  ;;  %1100 = vmatpush1.bf16.msra.mxu1 %v1099_v17  ;;  %v985_v1 = vpack.c.bf16 %v394_v56, %v390_v54  ;;  %v987_v10 = vpack.c.bf16 %v393_v63, %v389_v62  ;;  %v403_v17 = vld [vmem:[%s2222_s3 + $0x4b0] sm:$0xff]  ;;  %v424_v54 = vld [vmem:[%s2222_s3 + $0x558] sm:$0xff] }
  0x5c   :  { %1102 = vmatprep.subr.bf16.mxu1 %v1101_v18  ;;  %v406_v18 = vld [vmem:[%s2222_s3 + $0x4c8] sm:$0xff]  ;;  %v423_v62 = vld [vmem:[%s2222_s3 + $0x550] sm:$0xff] }
  0x5d   :  { %v427_v63 = vld [vmem:[%s2222_s3 + $0x570] sm:$0xff] }
  0x5e   :  { %976 = vmatpush1.bf16.msra.mxu0 %v975_v8  ;;  %v400_v8 = vld [vmem:[%s2222_s3 + $0x498] sm:$0xff]  ;;  %v1131_v5 = vpack.c.bf16 %v427_v63, %v423_v62  ;;  %v465_v62 = vld [vmem:[%s2222_s3 + $0x6a0] sm:$0xff] }
  0x5f   :  { %1104 = vmatpush1.bf16.msra.mxu1 %v1103_v21  ;;  %978 = vmatprep.subr.bf16.mxu0 %v977_v25  ;;  %v1117_v15 = vpack.c.bf16 %v404_v9, %v400_v8  ;;  %v408_v21 = vld [vmem:[%s2222_s3 + $0x4d8] sm:$0xff]  ;;  %v1119_v25 = vpack.c.bf16 %v403_v17, %v399_v16  ;;  %v433_v8 = vld [vmem:[%s2222_s3 + $0x5a0] sm:$0xff] }
  0x60   :  { %1106 = vmatprep.subr.bf16.mxu1 %v1105_v29  ;;  %v993_v29 = vpack.c.bf16 %v410_v20, %v406_v18  ;;  %v444_v16 = vld [vmem:[%s2222_s3 + $0x5f8] sm:$0xff]  ;;  %v1007_v17 = vpack.c.bf16 %v433_v8, %v429_v7  ;;  %v441_v20 = vld [vmem:[%s2222_s3 + $0x5e0] sm:$0xff] }
  0x61   :  { %v476_v7 = vld [vmem:[%s2222_s3 + $0x6f8] sm:$0xff] }
  0x62   :  { %980 = vmatpush1.bf16.msra.mxu0 %v979_v30  ;;  %v1121_v30 = vpack.c.bf16 %v412_v22, %v408_v21 }
  0x63   :  { %1108 = vmatpush1.bf16.msra.mxu1 %v1107_v33  ;;  %982 = vmatprep.subr.bf16.mxu0 %v981_v37  ;;  %v414_v33 = vld [vmem:[%s2222_s3 + $0x508] sm:$0xff]  ;;  %v420_v37 = vld [vmem:[%s2222_s3 + $0x538] sm:$0xff] }
  0x64   :  { %1110 = vmatprep.subr.bf16.mxu1 %v1109_v39  ;;  %v995_v39 = vpack.c.bf16 %v409_v27, %v405_v26  ;;  %v997_v48 = vpack.c.bf16 %v418_v35, %v414_v33  ;;  %v1125_v49 = vpack.c.bf16 %v420_v37, %v416_v36  ;;  %v446_v26 = vld [vmem:[%s2222_s3 + $0x608] sm:$0xff]  ;;  %v449_v33 = vld [vmem:[%s2222_s3 + $0x620] sm:$0xff]  ;;  %v447_v36 = vld [vmem:[%s2222_s3 + $0x610] sm:$0xff] }
  0x65   :  { %v450_v27 = vld [vmem:[%s2222_s3 + $0x628] sm:$0xff]  ;;  %v451_v37 = vld [vmem:[%s2222_s3 + $0x630] sm:$0xff] }
  0xf8   :  { %v173_v47 = vpop.f32.mrb[0].mxu0 }
  0xf9   :  { %v174_v50 = vadd.f32 %v173_v47, %v90_v45  ;;  %v175_v51 = vpop.f32.mrb[1].mxu0  ;;  %v1902_v23 = vpop.f32.mrb[0].mxu1  ;;  %v1123_v45 = vpack.c.bf16 %v411_v32, %v407_v31  ;;  %v417_v47 = vld [vmem:[%s2222_s3 + $0x520] sm:$0xff] }
  0xfa   :  { %v176_v55 = vadd.f32 %v175_v51, %v94_v46  ;;  %v246_v28 = vpop.f32.mrb[1].mxu1  ;;  %v413_v46 = vld [vmem:[%s2222_s3 + $0x500] sm:$0xff]  ;;  %v419_v51 = vld [vmem:[%s2222_s3 + $0x530] sm:$0xff] }
  0xfb   :  { %v249_v0 = vmax.f32 %v174_v50, 0.0  ;;  %v247_v34 = vadd.f32 %v246_v28, %v102_v19  ;;  %v415_v50 = vld [vmem:[%s2222_s3 + $0x510] sm:$0xff]  ;;  %v999_v56 = vpack.c.bf16 %v417_v47, %v413_v46  ;;  %v437_v19 = vld [vmem:[%s2222_s3 + $0x5c0] sm:$0xff]  ;;  %v448_v28 = vld [vmem:[%s2222_s3 + $0x618] sm:$0xff] }
  0xfc   :  { %v250_v59 = vmax.f32 %v176_v55, 0.0  ;;  %v428_v55 = vld [vmem:[%s2222_s3 + $0x578] sm:$0xff]  ;;  %v1127_v57 = vpack.c.bf16 %v419_v51, %v415_v50  ;;  %v445_v32 = vld [vmem:[%s2222_s3 + $0x600] sm:$0xff] }
  0xfd   :  { %v252_v38 = vmax.f32 %v247_v34, 0.0  ;;  %v1013_v34 = vpack.c.bf16 %v450_v27, %v446_v26  ;;  %v460_v46 = vld [vmem:[%s2222_s3 + $0x678] sm:$0xff]  ;;  %v1015_v47 = vpack.c.bf16 %v449_v33, %v445_v32  ;;  %v457_v50 = vld [vmem:[%s2222_s3 + $0x660] sm:$0xff]  ;;  %v479_v27 = vld [vmem:[%s2222_s3 + $0x710] sm:$0xff] }
  0xfe   :  { %595 = vmatprep.mubr.f32.mxu0 %v250_v59  ;;  %737 = vmatprep.mubr.f32.mxu1 %v250_v59  ;;  %v425_v59 = vld [vmem:[%s2222_s3 + $0x560] sm:$0xff]  ;;  %v492_v32 = vld [vmem:[%s2222_s3 + $0x778] sm:$0xff] }
  0xff   :  { %596 = vmatmul.mubr.f32.vlgmr.msra.gmra.mrb[2].mxu0 %v249_v0  ;;  %738 = vmatmul.mubr.f32.vlgmr.msra.gmra.mrb[2].mxu1 %v249_v0  ;;  %v430_v0 = vld [vmem:[%s2222_s3 + $0x588] sm:$0xff]  ;;  %v1003_v4 = vpack.c.bf16 %v425_v59, %v421_v58  ;;  %v468_v58 = vld [vmem:[%s2222_s3 + $0x6b8] sm:$0xff] }
 0x100   :  { %984 = vmatpush1.bf16.msra.mxu0 %v983_v60  ;;  %1112 = vmatpush1.bf16.msra.mxu1 %v1111_v61  ;;  %v1001_v60 = vpack.c.bf16 %v426_v53, %v422_v52  ;;  %v1129_v61 = vpack.c.bf16 %v428_v55, %v424_v54  ;;  %v455_v53 = vld [vmem:[%s2222_s3 + $0x650] sm:$0xff]  ;;  %v462_v55 = vld [vmem:[%s2222_s3 + $0x688] sm:$0xff] }
 0x101   :  { %986 = vmatprep.subr.bf16.mxu0 %v985_v1  ;;  %1114 = vmatprep.subr.bf16.mxu1 %v1113_v2  ;;  %v434_v1 = vld [vmem:[%s2222_s3 + $0x5a8] sm:$0xff]  ;;  %v432_v2 = vld [vmem:[%s2222_s3 + $0x598] sm:$0xff]  ;;  %v459_v54 = vld [vmem:[%s2222_s3 + $0x670] sm:$0xff] }
 0x102   :  { %666 = vmatprep.mubr.f32.mxu0 %v252_v38  ;;  %808 = vmatprep.mubr.f32.mxu1 %v252_v38  ;;  %v1005_v9 = vpack.c.bf16 %v434_v1, %v430_v0  ;;  %v454_v38 = vld [vmem:[%s2222_s3 + $0x648] sm:$0xff]  ;;  %v463_v1 = vld [vmem:[%s2222_s3 + $0x690] sm:$0xff] }
 0x104   :  { %988 = vmatpush1.bf16.msra.mxu0 %v987_v10  ;;  %1116 = vmatpush1.bf16.msra.mxu1 %v1115_v11  ;;  %v1133_v10 = vpack.c.bf16 %v436_v3, %v432_v2  ;;  %v431_v11 = vld [vmem:[%s2222_s3 + $0x590] sm:$0xff]  ;;  %v470_v3 = vld [vmem:[%s2222_s3 + $0x6c8] sm:$0xff] }
 0x105   :  { %990 = vmatprep.subr.bf16.mxu0 %v989_v14  ;;  %1118 = vmatprep.subr.bf16.mxu1 %v1117_v15  ;;  %v442_v14 = vld [vmem:[%s2222_s3 + $0x5e8] sm:$0xff]  ;;  %v440_v15 = vld [vmem:[%s2222_s3 + $0x5d8] sm:$0xff]  ;;  %v1135_v18 = vpack.c.bf16 %v435_v12, %v431_v11  ;;  %v467_v2 = vld [vmem:[%s2222_s3 + $0x6b0] sm:$0xff] }
 0x106   :  { %v1009_v21 = vpack.c.bf16 %v442_v14, %v438_v13  ;;  %v1137_v22 = vpack.c.bf16 %v444_v16, %v440_v15  ;;  %v473_v11 = vld [vmem:[%s2222_s3 + $0x6e0] sm:$0xff]  ;;  %v471_v14 = vld [vmem:[%s2222_s3 + $0x6d0] sm:$0xff]  ;;  %v478_v16 = vld [vmem:[%s2222_s3 + $0x708] sm:$0xff] }
 0x107   :  { %v475_v15 = vld [vmem:[%s2222_s3 + $0x6f0] sm:$0xff] }
 0x108   :  { %992 = vmatpush1.bf16.msra.mxu0 %v991_v24  ;;  %1120 = vmatpush1.bf16.msra.mxu1 %v1119_v25  ;;  %v439_v24 = vld [vmem:[%s2222_s3 + $0x5d0] sm:$0xff] }
 0x109   :  { %994 = vmatprep.subr.bf16.mxu0 %v993_v29  ;;  %1122 = vmatprep.subr.bf16.mxu1 %v1121_v30  ;;  %v443_v25 = vld [vmem:[%s2222_s3 + $0x5f0] sm:$0xff]  ;;  %v452_v29 = vld [vmem:[%s2222_s3 + $0x638] sm:$0xff]  ;;  %v1011_v30 = vpack.c.bf16 %v441_v20, %v437_v19 }
 0x10a   :  { %v1139_v31 = vpack.c.bf16 %v443_v25, %v439_v24  ;;  %v1141_v35 = vpack.c.bf16 %v452_v29, %v448_v28  ;;  %v484_v19 = vld [vmem:[%s2222_s3 + $0x738] sm:$0xff]  ;;  %v481_v24 = vld [vmem:[%s2222_s3 + $0x720] sm:$0xff]  ;;  %v483_v28 = vld [vmem:[%s2222_s3 + $0x730] sm:$0xff] }
 0x10b   :  { %v486_v29 = vld [vmem:[%s2222_s3 + $0x748] sm:$0xff] }
 0x10c   :  { %996 = vmatpush1.bf16.msra.mxu0 %v995_v39  ;;  %1124 = vmatpush1.bf16.msra.mxu1 %v1123_v45  ;;  %v458_v39 = vld [vmem:[%s2222_s3 + $0x668] sm:$0xff]  ;;  %v456_v45 = vld [vmem:[%s2222_s3 + $0x658] sm:$0xff] }
 0x10d   :  { %998 = vmatprep.subr.bf16.mxu0 %v997_v48  ;;  %1126 = vmatprep.subr.bf16.mxu1 %v1125_v49  ;;  %v1143_v48 = vpack.c.bf16 %v451_v37, %v447_v36  ;;  %v453_v49 = vld [vmem:[%s2222_s3 + $0x640] sm:$0xff]  ;;  %v1017_v51 = vpack.c.bf16 %v458_v39, %v454_v38  ;;  %v1145_v52 = vpack.c.bf16 %v460_v46, %v456_v45  ;;  %v487_v39 = vld [vmem:[%s2222_s3 + $0x750] sm:$0xff]  ;;  %v494_v46 = vld [vmem:[%s2222_s3 + $0x788] sm:$0xff] }
 0x10e   :  { %v1019_v59 = vpack.c.bf16 %v457_v50, %v453_v49  ;;  %v489_v36 = vld [vmem:[%s2222_s3 + $0x760] sm:$0xff]  ;;  %v491_v45 = vld [vmem:[%s2222_s3 + $0x770] sm:$0xff]  ;;  %v500_v49 = vld [vmem:[%s2222_s3 + $0x7b8] sm:$0xff] }
 0x110   :  { %1000 = vmatpush1.bf16.msra.mxu0 %v999_v56  ;;  %1128 = vmatpush1.bf16.msra.mxu1 %v1127_v57  ;;  %v466_v56 = vld [vmem:[%s2222_s3 + $0x6a8] sm:$0xff]  ;;  %v464_v57 = vld [vmem:[%s2222_s3 + $0x698] sm:$0xff] }
 0x111   :  { %1002 = vmatprep.subr.bf16.mxu0 %v1001_v60  ;;  %1130 = vmatprep.subr.bf16.mxu1 %v1129_v61  ;;  %v1147_v60 = vpack.c.bf16 %v459_v54, %v455_v53  ;;  %v461_v61 = vld [vmem:[%s2222_s3 + $0x680] sm:$0xff]  ;;  %v1021_v63 = vpack.c.bf16 %v466_v56, %v462_v55  ;;  %v1149_v0 = vpack.c.bf16 %v468_v58, %v464_v57  ;;  %v97_v54 = vsub.s32 2, %v1811_v41  ;;  %v495_v57 = vld [vmem:[%s2222_s3 + $0x790] sm:$0xff] }
 0x112   :  { %v1023_v8 = vpack.c.bf16 %v465_v62, %v461_v61  ;;  %v497_v53 = vld [vmem:[%s2222_s3 + $0x7a0] sm:$0xff]  ;;  %v499_v58 = vld [vmem:[%s2222_s3 + $0x7b0] sm:$0xff]  ;;  %v504_v61 = vld [vmem:[%s2222_s3 + $0x7d8] sm:$0xff] }
 0x113   :  { %v508_v62 = vld [vmem:[%s2222_s3 + $0x7f8] sm:$0xff] }
 0x114   :  { %1004 = vmatpush1.bf16.msra.mxu0 %v1003_v4  ;;  %1132 = vmatpush1.bf16.msra.mxu1 %v1131_v5  ;;  %v474_v4 = vld [vmem:[%s2222_s3 + $0x6e8] sm:$0xff]  ;;  %v472_v5 = vld [vmem:[%s2222_s3 + $0x6d8] sm:$0xff] }
 0x115   :  { %1006 = vmatprep.subr.bf16.mxu0 %v1005_v9  ;;  %1134 = vmatprep.subr.bf16.mxu1 %v1133_v10  ;;  %v1151_v9 = vpack.c.bf16 %v467_v2, %v463_v1  ;;  %v469_v10 = vld [vmem:[%s2222_s3 + $0x6c0] sm:$0xff]  ;;  %v1025_v12 = vpack.c.bf16 %v474_v4, %v470_v3  ;;  %v1153_v13 = vpack.c.bf16 %v476_v7, %v472_v5  ;;  %v503_v7 = vld [vmem:[%s2222_s3 + $0x7d0] sm:$0xff] }
 0x116   :  { %v1027_v20 = vpack.c.bf16 %v473_v11, %v469_v10  ;;  %v501_v1 = vld [vmem:[%s2222_s3 + $0x7c0] sm:$0xff]  ;;  %v98_v2 = vrot.slane %v1817_v43, %v97_v54  ;;  %v1169_v4 = vpack.c.bf16 %v508_v62, %v504_v61 }
 0x117   :  { %v505_v5 = vld [vmem:[%s2222_s3 + $0x7e0] sm:$0xff] }
 0x118   :  { %1008 = vmatpush1.bf16.msra.mxu0 %v1007_v17  ;;  %1136 = vmatpush1.bf16.msra.mxu1 %v1135_v18  ;;  %v482_v17 = vld [vmem:[%s2222_s3 + $0x728] sm:$0xff]  ;;  %v480_v18 = vld [vmem:[%s2222_s3 + $0x718] sm:$0xff]  ;;  %v245_v10 = vadd.f32 %v1902_v23, %v98_v2 }
 0x119   :  { %1010 = vmatprep.subr.bf16.mxu0 %v1009_v21  ;;  %1138 = vmatprep.subr.bf16.mxu1 %v1137_v22  ;;  %v1155_v21 = vpack.c.bf16 %v475_v15, %v471_v14  ;;  %v477_v22 = vld [vmem:[%s2222_s3 + $0x700] sm:$0xff]  ;;  %v1029_v25 = vpack.c.bf16 %v482_v17, %v478_v16  ;;  %v1157_v26 = vpack.c.bf16 %v484_v19, %v480_v18 }
 0x11a   :  { %v1031_v33 = vpack.c.bf16 %v481_v24, %v477_v22  ;;  %v251_v11 = vmax.f32 %v245_v10, 0.0 }
 0x11c   :  { %1012 = vmatpush1.bf16.msra.mxu0 %v1011_v30  ;;  %1140 = vmatpush1.bf16.msra.mxu1 %v1139_v31  ;;  %v490_v30 = vld [vmem:[%s2222_s3 + $0x768] sm:$0xff]  ;;  %v488_v31 = vld [vmem:[%s2222_s3 + $0x758] sm:$0xff] }
 0x11d   :  { %1014 = vmatprep.subr.bf16.mxu0 %v1013_v34  ;;  %1142 = vmatprep.subr.bf16.mxu1 %v1141_v35  ;;  %v1159_v34 = vpack.c.bf16 %v483_v28, %v479_v27  ;;  %v485_v35 = vld [vmem:[%s2222_s3 + $0x740] sm:$0xff]  ;;  %v1033_v37 = vpack.c.bf16 %v490_v30, %v486_v29  ;;  %v1161_v38 = vpack.c.bf16 %v492_v32, %v488_v31 }
 0x11e   :  { %v1035_v50 = vpack.c.bf16 %v489_v36, %v485_v35 }
 0x120   :  { %1016 = vmatpush1.bf16.msra.mxu0 %v1015_v47  ;;  %1144 = vmatpush1.bf16.msra.mxu1 %v1143_v48  ;;  %v498_v47 = vld [vmem:[%s2222_s3 + $0x7a8] sm:$0xff]  ;;  %v496_v48 = vld [vmem:[%s2222_s3 + $0x798] sm:$0xff] }
 0x121   :  { %1018 = vmatprep.subr.bf16.mxu0 %v1017_v51  ;;  %1146 = vmatprep.subr.bf16.mxu1 %v1145_v52  ;;  %v1163_v51 = vpack.c.bf16 %v491_v45, %v487_v39  ;;  %v493_v52 = vld [vmem:[%s2222_s3 + $0x780] sm:$0xff]  ;;  %v1037_v55 = vpack.c.bf16 %v498_v47, %v494_v46  ;;  %v1165_v56 = vpack.c.bf16 %v500_v49, %v496_v48 }
 0x124   :  { %1020 = vmatpush1.bf16.msra.mxu0 %v1019_v59  ;;  %1148 = vmatpush1.bf16.msra.mxu1 %v1147_v60  ;;  %v502_v59 = vld [vmem:[%s2222_s3 + $0x7c8] sm:$0xff] }
 0x125   :  { %1022 = vmatprep.subr.bf16.mxu0 %v1021_v63  ;;  %1150 = vmatprep.subr.bf16.mxu1 %v1149_v0  ;;  %v506_v60 = vld [vmem:[%s2222_s3 + $0x7e8] sm:$0xff]  ;;  %v1039_v63 = vpack.c.bf16 %v497_v53, %v493_v52  ;;  %v1167_v0 = vpack.c.bf16 %v499_v58, %v495_v57 }
 0x126   :  { %v1041_v3 = vpack.c.bf16 %v506_v60, %v502_v59 }
 0x128   :  { %1024 = vmatpush1.bf16.msra.mxu0 %v1023_v8  ;;  %1152 = vmatpush1.bf16.msra.mxu1 %v1151_v9  ;;  %v507_v8 = vld [vmem:[%s2222_s3 + $0x7f0] sm:$0xff]  ;;  %v1043_v9 = vpack.c.bf16 %v505_v5, %v501_v1 }
 0x129   :  { %1026 = vmatprep.subr.bf16.mxu0 %v1025_v12  ;;  %1154 = vmatprep.subr.bf16.mxu1 %v1153_v13  ;;  %v1171_v43 = vpack.c.bf16 %v507_v8, %v503_v7  ;;  %v509_v12 = vld [vmem:[%s2225_s4] sm:$0xf]  ;;  %v1184_v13 = vmov 1966171168  }
 0x12a   :  { %v822_v14 = vunpack.c.l.s4 %v1184_v13  ;;  %v514_v15 = vrot.slane %v509_v12, %v89_v42  ;;  %v522_v16 = vrot.slane %v509_v12, %v97_v54  ;;  %v518_v23 = vrot.slane %v509_v12, %v93_v44 }
 0x12b   :  { %v526_v18 = vrot.slane %v509_v12, %v101_v6 }
 0x12c   :  { %1028 = vmatpush1.bf16.msra.mxu0 %v1027_v20  ;;  %1156 = vmatpush1.bf16.msra.mxu1 %v1155_v21  ;;  %v823_v17 = vunpack.c.0.s8 %v822_v14 }
 0x12d   :  { %1030 = vmatprep.subr.bf16.mxu0 %v1029_v25  ;;  %1158 = vmatprep.subr.bf16.mxu1 %v1157_v26 }
 0x12e   :  { %v826_v27 = vsub.s32 %v823_v17, %v1811_v41 }
 0x130   :  { %1032 = vmatpush1.bf16.msra.mxu0 %v1031_v33  ;;  %1160 = vmatpush1.bf16.msra.mxu1 %v1159_v34 }
 0x131   :  { %1034 = vmatprep.subr.bf16.mxu0 %v1033_v37  ;;  %1162 = vmatprep.subr.bf16.mxu1 %v1161_v38 }
 0x134   :  { %1036 = vmatpush1.bf16.msra.mxu0 %v1035_v50  ;;  %1164 = vmatpush1.bf16.msra.mxu1 %v1163_v51 }
 0x135   :  { %1038 = vmatprep.subr.bf16.mxu0 %v1037_v55  ;;  %1166 = vmatprep.subr.bf16.mxu1 %v1165_v56 }
 0x138   :  { %1040 = vmatpush1.bf16.msra.mxu0 %v1039_v63  ;;  %1168 = vmatpush1.bf16.msra.mxu1 %v1167_v0 }
 0x139   :  { %1042 = vmatprep.subr.bf16.mxu0 %v1041_v3  ;;  %1170 = vmatprep.subr.bf16.mxu1 %v1169_v4 }
 0x13c   :  { %1044 = vmatpush1.bf16.msra.mxu0 %v1043_v9  ;;  %1172 = vmatpush1.bf16.msra.mxu1 %v1171_v43 }
 0x13f   :  { %667 = vmatmul.mubr.f32.vlgmr.msra.gmra.mrb[2].mxu0 %v251_v11  ;;  %809 = vmatmul.mubr.f32.vlgmr.msra.gmra.mrb[2].mxu1 %v251_v11 }
 0x212   :  { %v668_v19 = vpop.f32.mrb[2].mxu0  ;;  %v810_v20 = vpop.f32.mrb[2].mxu1 }
 0x213   :  { %v1173_v21 = vadd.f32 %v668_v19, %v514_v15  ;;  %v1175_v22 = vadd.f32 %v810_v20, %v522_v16  ;;  %v670_v24 = vpop.f32.mrb[3].mxu0  ;;  %v812_v25 = vpop.f32.mrb[3].mxu1 }
 0x214   :  { %v1174_v26 = vadd.f32 %v670_v24, %v518_v23  ;;  %v1176_v28 = vadd.f32 %v812_v25, %v526_v18 }
 0x216   :  { %v819_v29 = vcombine.low %v1173_v21, %v1174_v26  ;;  %v820_v42 = vcombine.low %v1175_v22, %v1176_v28 }
 0x218   :  { %v827_v30 = vrot.slane %v819_v29, %v826_v27  ;;  %v834_v31 = vrot.slane %v820_v42, %v826_v27 }
 0x21a   :  { %v835_v32 = vcombine.low %v827_v30, %v834_v31 }
 0x21c   :  { %v842_v44 = vrot.slane %v835_v32, %v826_v27 }
 0x21e   :  { %848 = vst.msk [vmem:[%s2226_s5] sm:$0xf] %vm846_vm0, %v842_v44 }

// kernel: _encode_pair.2
= control target key start
LH: loop header
LB: loop body
LE: loop exit
PB: predicated region body
PF: predicated region fallthrough
CT: control target
= control target key end

     0   :  { %v410_v3 = vmov 0.0   ;;  %s742_s1 = inlined_call_operand.vmem [shape: f32[128,256], index: 1, kind: input, shape index: {}]   ;;  %s743_s3 = inlined_call_operand.vmem [shape: f32[256,256], index: 3, kind: input, shape index: {}]   ;;  %s744_s0 = inlined_call_operand.vmem [shape: f32[1,128], index: 0, kind: input, shape index: {}]   ;;  %s745_s2 = inlined_call_operand.vmem [shape: f32[1,256], index: 2, kind: input, shape index: {}]   ;;  %s746_s4 = inlined_call_operand.vmem [shape: f32[1,256], index: 4, kind: input, shape index: {}]   ;;  %s747_s5 = inlined_call_operand.vmem [shape: f32[1,256], index: 5, kind: output, shape index: {}]  }
   0x1   :  { %v22_v0 = vld [vmem:[%s742_s1 + $0x8] sm:$0xff]  ;;  %v24_v1 = vld [vmem:[%s742_s1 + $0x18] sm:$0xff]  ;;  %v21_v2 = vld [vmem:[%s742_s1] sm:$0xff]  ;;  %129 = vmatprep.mubr.f32.mxu0 %v410_v3 }
   0x2   :  { %v312_v4 = vpack.c.bf16 %v24_v1, %v22_v0  ;;  %v23_v5 = vld [vmem:[%s742_s1 + $0x10] sm:$0xff]  ;;  %v26_v6 = vld [vmem:[%s742_s1 + $0x28] sm:$0xff]  ;;  %v28_v7 = vld [vmem:[%s742_s1 + $0x38] sm:$0xff] }
   0x3   :  { %v314_v8 = vpack.c.bf16 %v23_v5, %v21_v2  ;;  %v316_v9 = vpack.c.bf16 %v28_v7, %v26_v6  ;;  %v25_v10 = vld [vmem:[%s742_s1 + $0x20] sm:$0xff]  ;;  %v27_v11 = vld [vmem:[%s742_s1 + $0x30] sm:$0xff]  ;;  %v30_v12 = vld [vmem:[%s742_s1 + $0x48] sm:$0xff] }
   0x4   :  { %313 = vmatprep.subr.bf16.mxu0 %v312_v4  ;;  %v32_v13 = vld [vmem:[%s742_s1 + $0x58] sm:$0xff]  ;;  %v318_v14 = vpack.c.bf16 %v27_v11, %v25_v10  ;;  %v29_v16 = vld [vmem:[%s742_s1 + $0x40] sm:$0xff]  ;;  %v31_v17 = vld [vmem:[%s742_s1 + $0x50] sm:$0xff] }
   0x5   :  { %315 = vmatpush1.bf16.msra.mxu0 %v314_v8  ;;  %v320_v15 = vpack.c.bf16 %v32_v13, %v30_v12  ;;  %v34_v18 = vld [vmem:[%s742_s1 + $0x68] sm:$0xff]  ;;  %v36_v19 = vld [vmem:[%s742_s1 + $0x78] sm:$0xff]  ;;  %v322_v20 = vpack.c.bf16 %v31_v17, %v29_v16  ;;  %v33_v22 = vld [vmem:[%s742_s1 + $0x60] sm:$0xff] }
   0x6   :  { %317 = vmatprep.subr.bf16.mxu0 %v316_v9  ;;  %v324_v21 = vpack.c.bf16 %v36_v19, %v34_v18  ;;  %v35_v23 = vld [vmem:[%s742_s1 + $0x70] sm:$0xff]  ;;  %v38_v24 = vld [vmem:[%s742_s1 + $0x88] sm:$0xff]  ;;  %v40_v25 = vld [vmem:[%s742_s1 + $0x98] sm:$0xff] }
   0x7   :  { %v37_v26 = vld [vmem:[%s742_s1 + $0x80] sm:$0xff]  ;;  %v39_v27 = vld [vmem:[%s742_s1 + $0x90] sm:$0xff]  ;;  %v139_v28 = vld [vmem:[%s743_s3 + $0x8] sm:$0xff]  ;;  %v326_v31 = vpack.c.bf16 %v35_v23, %v33_v22  ;;  %v328_v36 = vpack.c.bf16 %v40_v25, %v38_v24 }
   0x8   :  { %v141_v29 = vld [vmem:[%s743_s3 + $0x18] sm:$0xff]  ;;  %v138_v30 = vld [vmem:[%s743_s3] sm:$0xff]  ;;  %v140_v33 = vld [vmem:[%s743_s3 + $0x10] sm:$0xff]  ;;  %v330_v46 = vpack.c.bf16 %v39_v27, %v37_v26 }
   0x9   :  { %319 = vmatpush1.bf16.msra.mxu0 %v318_v14  ;;  %v344_v32 = vpack.c.bf16 %v141_v29, %v139_v28  ;;  %v143_v34 = vld [vmem:[%s743_s3 + $0x28] sm:$0xff]  ;;  %v145_v35 = vld [vmem:[%s743_s3 + $0x38] sm:$0xff]  ;;  %v346_v37 = vpack.c.bf16 %v140_v33, %v138_v30  ;;  %v142_v39 = vld [vmem:[%s743_s3 + $0x20] sm:$0xff] }
   0xa   :  { %321 = vmatprep.subr.bf16.mxu0 %v320_v15  ;;  %v348_v38 = vpack.c.bf16 %v145_v35, %v143_v34  ;;  %v144_v40 = vld [vmem:[%s743_s3 + $0x30] sm:$0xff]  ;;  %v147_v41 = vld [vmem:[%s743_s3 + $0x48] sm:$0xff]  ;;  %v44_v43 = vld [vmem:[%s742_s1 + $0xb8] sm:$0xff] }
   0xb   :  { %v42_v42 = vld [vmem:[%s742_s1 + $0xa8] sm:$0xff]  ;;  %345 = vmatprep.subr.bf16.mxu1 %v344_v32  ;;  %v149_v44 = vld [vmem:[%s743_s3 + $0x58] sm:$0xff]  ;;  %v350_v45 = vpack.c.bf16 %v144_v40, %v142_v39  ;;  %v41_v47 = vld [vmem:[%s742_s1 + $0xa0] sm:$0xff] }
   0xc   :  { %347 = vmatpush1.bf16.msra.mxu1 %v346_v37  ;;  %v352_v48 = vpack.c.bf16 %v149_v44, %v147_v41  ;;  %v146_v49 = vld [vmem:[%s743_s3 + $0x40] sm:$0xff]  ;;  %v148_v50 = vld [vmem:[%s743_s3 + $0x50] sm:$0xff]  ;;  %v332_v51 = vpack.c.bf16 %v44_v43, %v42_v42  ;;  %v151_v53 = vld [vmem:[%s743_s3 + $0x68] sm:$0xff] }
   0xd   :  { %323 = vmatpush1.bf16.msra.mxu0 %v322_v20  ;;  %349 = vmatprep.subr.bf16.mxu1 %v348_v38  ;;  %v43_v52 = vld [vmem:[%s742_s1 + $0xb0] sm:$0xff]  ;;  %v153_v54 = vld [vmem:[%s743_s3 + $0x78] sm:$0xff]  ;;  %v46_v55 = vld [vmem:[%s742_s1 + $0xc8] sm:$0xff]  ;;  %v354_v57 = vpack.c.bf16 %v148_v50, %v146_v49 }
   0xe   :  { %325 = vmatprep.subr.bf16.mxu0 %v324_v21  ;;  %v48_v56 = vld [vmem:[%s742_s1 + $0xd8] sm:$0xff]  ;;  %v334_v58 = vpack.c.bf16 %v43_v52, %v41_v47  ;;  %v45_v59 = vld [vmem:[%s742_s1 + $0xc0] sm:$0xff]  ;;  %v356_v60 = vpack.c.bf16 %v153_v54, %v151_v53  ;;  %v152_v62 = vld [vmem:[%s743_s3 + $0x70] sm:$0xff] }
   0xf   :  { %v150_v61 = vld [vmem:[%s743_s3 + $0x60] sm:$0xff]  ;;  %v336_v63 = vpack.c.bf16 %v48_v56, %v46_v55  ;;  %v47_v0 = vld [vmem:[%s742_s1 + $0xd0] sm:$0xff]  ;;  %v155_v1 = vld [vmem:[%s743_s3 + $0x88] sm:$0xff] }
  0x10   :  { %351 = vmatpush1.bf16.msra.mxu1 %v350_v45  ;;  %v157_v2 = vld [vmem:[%s743_s3 + $0x98] sm:$0xff]  ;;  %v50_v3 = vld [vmem:[%s742_s1 + $0xe8] sm:$0xff]  ;;  %v358_v5 = vpack.c.bf16 %v152_v62, %v150_v61  ;;  %v338_v6 = vpack.c.bf16 %v47_v0, %v45_v59  ;;  %v49_v7 = vld [vmem:[%s742_s1 + $0xe0] sm:$0xff] }
  0x11   :  { %327 = vmatpush1.bf16.msra.mxu0 %v326_v31  ;;  %353 = vmatprep.subr.bf16.mxu1 %v352_v48  ;;  %v52_v4 = vld [vmem:[%s742_s1 + $0xf8] sm:$0xff]  ;;  %v360_v8 = vpack.c.bf16 %v157_v2, %v155_v1  ;;  %v154_v9 = vld [vmem:[%s743_s3 + $0x80] sm:$0xff]  ;;  %v156_v10 = vld [vmem:[%s743_s3 + $0x90] sm:$0xff] }
  0x12   :  { %329 = vmatprep.subr.bf16.mxu0 %v328_v36  ;;  %v340_v11 = vpack.c.bf16 %v52_v4, %v50_v3  ;;  %v51_v12 = vld [vmem:[%s742_s1 + $0xf0] sm:$0xff]  ;;  %v159_v13 = vld [vmem:[%s743_s3 + $0xa8] sm:$0xff]  ;;  %v161_v14 = vld [vmem:[%s743_s3 + $0xb8] sm:$0xff]  ;;  %v362_v15 = vpack.c.bf16 %v156_v10, %v154_v9 }
  0x13   :  { %v342_v16 = vpack.c.bf16 %v51_v12, %v49_v7  ;;  %v364_v17 = vpack.c.bf16 %v161_v14, %v159_v13  ;;  %v158_v18 = vld [vmem:[%s743_s3 + $0xa0] sm:$0xff]  ;;  %v160_v19 = vld [vmem:[%s743_s3 + $0xb0] sm:$0xff]  ;;  %v163_v20 = vld [vmem:[%s743_s3 + $0xc8] sm:$0xff] }
  0x14   :  { %355 = vmatpush1.bf16.msra.mxu1 %v354_v57  ;;  %v165_v21 = vld [vmem:[%s743_s3 + $0xd8] sm:$0xff]  ;;  %v366_v22 = vpack.c.bf16 %v160_v19, %v158_v18  ;;  %v20_v23 = vld [vmem:[%s744_s0] sm:$0x1]  ;;  %v164_v26 = vld [vmem:[%s743_s3 + $0xd0] sm:$0xff]  ;;  %v55_v18 = vlaneseq }
  0x15   :  { %331 = vmatpush1.bf16.msra.mxu0 %v330_v46  ;;  %357 = vmatprep.subr.bf16.mxu1 %v356_v60  ;;  %v368_v24 = vpack.c.bf16 %v165_v21, %v163_v20  ;;  %v162_v25 = vld [vmem:[%s743_s3 + $0xc0] sm:$0xff]  ;;  %v167_v27 = vld [vmem:[%s743_s3 + $0xe8] sm:$0xff]  ;;  %v169_v28 = vld [vmem:[%s743_s3 + $0xf8] sm:$0xff] }
  0x16   :  { %333 = vmatprep.subr.bf16.mxu0 %v332_v51  ;;  %v370_v29 = vpack.c.bf16 %v164_v26, %v162_v25  ;;  %v372_v30 = vpack.c.bf16 %v169_v28, %v167_v27  ;;  %v166_v31 = vld [vmem:[%s743_s3 + $0xe0] sm:$0xff]  ;;  %v168_v32 = vld [vmem:[%s743_s3 + $0xf0] sm:$0xff]  ;;  %v171_v33 = vld [vmem:[%s743_s3 + $0x108] sm:$0xff]  ;;  %v56_v19 = vshrl.u32 %v55_v18, 7  ;;  %vm305_vm0 = vcmp.lt.s32.totalorder %v55_v18, 256 }
  0x17   :  { %v173_v34 = vld [vmem:[%s743_s3 + $0x118] sm:$0xff]  ;;  %v374_v35 = vpack.c.bf16 %v168_v32, %v166_v31  ;;  %v170_v37 = vld [vmem:[%s743_s3 + $0x100] sm:$0xff]  ;;  %v172_v38 = vld [vmem:[%s743_s3 + $0x110] sm:$0xff]  ;;  %v411_v32 = vmov 1966171168  }
  0x18   :  { %359 = vmatpush1.bf16.msra.mxu1 %v358_v5  ;;  %v376_v36 = vpack.c.bf16 %v173_v34, %v171_v33  ;;  %v175_v39 = vld [vmem:[%s743_s3 + $0x128] sm:$0xff]  ;;  %v177_v40 = vld [vmem:[%s743_s3 + $0x138] sm:$0xff]  ;;  %v378_v41 = vpack.c.bf16 %v172_v38, %v170_v37  ;;  %v174_v43 = vld [vmem:[%s743_s3 + $0x120] sm:$0xff]  ;;  %v57_v20 = vsub.s32 0, %v56_v19  ;;  %v289_v33 = vunpack.c.l.s4 %v411_v32 }
  0x19   :  { %335 = vmatpush1.bf16.msra.mxu0 %v334_v58  ;;  %361 = vmatprep.subr.bf16.mxu1 %v360_v8  ;;  %v380_v42 = vpack.c.bf16 %v177_v40, %v175_v39  ;;  %v176_v44 = vld [vmem:[%s743_s3 + $0x130] sm:$0xff]  ;;  %v179_v45 = vld [vmem:[%s743_s3 + $0x148] sm:$0xff]  ;;  %v181_v46 = vld [vmem:[%s743_s3 + $0x158] sm:$0xff] }
  0x1a   :  { %337 = vmatprep.subr.bf16.mxu0 %v336_v63  ;;  %v382_v47 = vpack.c.bf16 %v176_v44, %v174_v43  ;;  %v384_v48 = vpack.c.bf16 %v181_v46, %v179_v45  ;;  %v178_v49 = vld [vmem:[%s743_s3 + $0x140] sm:$0xff]  ;;  %v180_v50 = vld [vmem:[%s743_s3 + $0x150] sm:$0xff]  ;;  %v183_v51 = vld [vmem:[%s743_s3 + $0x168] sm:$0xff] }
  0x1b   :  { %v185_v52 = vld [vmem:[%s743_s3 + $0x178] sm:$0xff]  ;;  %v386_v53 = vpack.c.bf16 %v180_v50, %v178_v49  ;;  %v182_v55 = vld [vmem:[%s743_s3 + $0x160] sm:$0xff]  ;;  %v184_v56 = vld [vmem:[%s743_s3 + $0x170] sm:$0xff] }
  0x1c   :  { %363 = vmatpush1.bf16.msra.mxu1 %v362_v15  ;;  %v388_v54 = vpack.c.bf16 %v185_v52, %v183_v51  ;;  %v187_v57 = vld [vmem:[%s743_s3 + $0x188] sm:$0xff]  ;;  %v189_v58 = vld [vmem:[%s743_s3 + $0x198] sm:$0xff]  ;;  %v390_v59 = vpack.c.bf16 %v184_v56, %v182_v55  ;;  %v186_v61 = vld [vmem:[%s743_s3 + $0x180] sm:$0xff] }
  0x1d   :  { %339 = vmatpush1.bf16.msra.mxu0 %v338_v6  ;;  %365 = vmatprep.subr.bf16.mxu1 %v364_v17  ;;  %v392_v60 = vpack.c.bf16 %v189_v58, %v187_v57  ;;  %v188_v62 = vld [vmem:[%s743_s3 + $0x190] sm:$0xff]  ;;  %v191_v63 = vld [vmem:[%s743_s3 + $0x1a8] sm:$0xff]  ;;  %v193_v0 = vld [vmem:[%s743_s3 + $0x1b8] sm:$0xff] }
  0x1e   :  { %341 = vmatprep.subr.bf16.mxu0 %v340_v11  ;;  %v394_v1 = vpack.c.bf16 %v188_v62, %v186_v61  ;;  %v396_v2 = vpack.c.bf16 %v193_v0, %v191_v63  ;;  %v190_v3 = vld [vmem:[%s743_s3 + $0x1a0] sm:$0xff]  ;;  %v192_v4 = vld [vmem:[%s743_s3 + $0x1b0] sm:$0xff]  ;;  %v195_v5 = vld [vmem:[%s743_s3 + $0x1c8] sm:$0xff] }
  0x1f   :  { %v197_v6 = vld [vmem:[%s743_s3 + $0x1d8] sm:$0xff]  ;;  %v398_v7 = vpack.c.bf16 %v192_v4, %v190_v3  ;;  %v194_v9 = vld [vmem:[%s743_s3 + $0x1c0] sm:$0xff]  ;;  %v196_v10 = vld [vmem:[%s743_s3 + $0x1d0] sm:$0xff] }
  0x20   :  { %367 = vmatpush1.bf16.msra.mxu1 %v366_v22  ;;  %v400_v8 = vpack.c.bf16 %v197_v6, %v195_v5  ;;  %v402_v11 = vpack.c.bf16 %v196_v10, %v194_v9  ;;  %v199_v12 = vld [vmem:[%s743_s3 + $0x1e8] sm:$0xff]  ;;  %v201_v13 = vld [vmem:[%s743_s3 + $0x1f8] sm:$0xff]  ;;  %v198_v15 = vld [vmem:[%s743_s3 + $0x1e0] sm:$0xff]  ;;  %v61_v22 = vsub.s32 1, %v56_v19 }
  0x21   :  { %343 = vmatpush1.bf16.msra.mxu0 %v342_v16  ;;  %369 = vmatprep.subr.bf16.mxu1 %v368_v24  ;;  %v404_v14 = vpack.c.bf16 %v201_v13, %v199_v12  ;;  %v200_v16 = vld [vmem:[%s743_s3 + $0x1f0] sm:$0xff]  ;;  %v53_v21 = vld [vmem:[%s745_s2] sm:$0x3] }
  0x22   :  { %v406_v17 = vpack.c.bf16 %v200_v16, %v198_v15  ;;  %v62_v24 = vrot.slane %v53_v21, %v61_v22  ;;  %v202_v31 = vld [vmem:[%s746_s4] sm:$0x3] }
  0x23   :  { %v207_v34 = vrot.slane %v202_v31, %v57_v20 }
  0x24   :  { %130 = vmatmul.mubr.f32.vlgmr.msra.gmra.mrb[0].mxu0 %v20_v23  ;;  %371 = vmatpush1.bf16.msra.mxu1 %v370_v29  ;;  %v58_v23 = vrot.slane %v53_v21, %v57_v20 }
  0x25   :  { %373 = vmatprep.subr.bf16.mxu1 %v372_v30 }
  0x28   :  { %375 = vmatpush1.bf16.msra.mxu1 %v374_v35  ;;  %v211_v35 = vrot.slane %v202_v31, %v61_v22 }
  0x29   :  { %377 = vmatprep.subr.bf16.mxu1 %v376_v36  ;;  %v290_v36 = vunpack.c.0.s8 %v289_v33 }
  0x2c   :  { %379 = vmatpush1.bf16.msra.mxu1 %v378_v41  ;;  %v293_v41 = vsub.s32 %v290_v36, %v56_v19 }
  0x2d   :  { %381 = vmatprep.subr.bf16.mxu1 %v380_v42 }
  0x30   :  { %383 = vmatpush1.bf16.msra.mxu1 %v382_v47 }
  0x31   :  { %385 = vmatprep.subr.bf16.mxu1 %v384_v48 }
  0x34   :  { %387 = vmatpush1.bf16.msra.mxu1 %v386_v53 }
  0x35   :  { %389 = vmatprep.subr.bf16.mxu1 %v388_v54 }
  0x38   :  { %391 = vmatpush1.bf16.msra.mxu1 %v390_v59 }
  0x39   :  { %393 = vmatprep.subr.bf16.mxu1 %v392_v60 }
  0x3c   :  { %395 = vmatpush1.bf16.msra.mxu1 %v394_v1 }
  0x3d   :  { %397 = vmatprep.subr.bf16.mxu1 %v396_v2 }
  0x40   :  { %399 = vmatpush1.bf16.msra.mxu1 %v398_v7 }
  0x41   :  { %401 = vmatprep.subr.bf16.mxu1 %v400_v8 }
  0x44   :  { %403 = vmatpush1.bf16.msra.mxu1 %v402_v11 }
  0x45   :  { %405 = vmatprep.subr.bf16.mxu1 %v404_v14 }
  0x48   :  { %407 = vmatpush1.bf16.msra.mxu1 %v406_v17 }
  0xf7   :  { %v131_v25 = vpop.f32.mrb[0].mxu0 }
  0xf8   :  { %v132_v26 = vadd.f32 %v131_v25, %v58_v23  ;;  %v133_v27 = vpop.f32.mrb[1].mxu0 }
  0xf9   :  { %v134_v28 = vadd.f32 %v133_v27, %v62_v24 }
  0xfa   :  { %v136_v30 = vmax.f32 %v132_v26, 0.0 }
  0xfb   :  { %v137_v29 = vmax.f32 %v134_v28, 0.0 }
  0xfd   :  { %278 = vmatprep.mubr.f32.mxu1 %v137_v29 }
  0xfe   :  { %279 = vmatmul.mubr.f32.vlgmr.msra.gmra.mrb[0].mxu1 %v136_v30 }
 0x1d1   :  { %v280_v37 = vpop.f32.mrb[0].mxu1 }
 0x1d2   :  { %v281_v38 = vadd.f32 %v280_v37, %v207_v34  ;;  %v282_v39 = vpop.f32.mrb[1].mxu1 }
 0x1d3   :  { %v283_v40 = vadd.f32 %v282_v39, %v211_v35 }
 0x1d5   :  { %v287_v42 = vcombine.low %v281_v38, %v283_v40 }
 0x1d7   :  { %v294_v43 = vrot.slane %v287_v42, %v293_v41 }
 0x1d9   :  { %v301_v44 = vrot.slane %v294_v43, %v293_v41 }
 0x1db   :  { %307 = vst.msk [vmem:[%s747_s5] sm:$0x3] %vm305_vm0, %v301_v44 }

</bundles_post_ra>
